<compile_context>
chip_gen: v7x
topology: tpu7x:2x2x1
jax: 0.10.0
libtpu: 0.0.40
codegen_flags: <defaults>
</compile_context>

<pallas_src>
import functools

import jax
import jax.numpy as jnp
from jax.experimental import pallas as pl
from jax.experimental.pallas import tpu as pltpu


def _round_up(x, m):
    return (x + m - 1) // m * m


def _default_batch_blocks(B, HW):
    """1 grid step on single-TC chips; split batch across v7x's 2 TCs."""
    if B < 2:
        return 1
    try:
        kind = jax.devices()[0].device_kind.lower()
    except Exception:
        kind = ""
    if ("v7" in kind or "7x" in kind) and B % 2 == 0 and ((B // 2) * HW) % 128 == 0:
        return 2
    return 1


def _merge_kernel(x_ref, aux_ref, w_ref, o_ref, *, W, n_lanes, cp):
    """Fused 4x (3x3 conv [+ folded BN/bias] [+ ReLU]) on one lane-block.

    x_ref   : (cp, n_lanes)        f32 VMEM  channel-major, batch*spatial on lanes
    aux_ref : (9*cp + 8, n_lanes)  f32 VMEM  rows [t*cp:(t+1)*cp] = halo mask of
                                             tap t (pre-broadcast to cp rows);
                                             rows [9*cp:9*cp+8] = [ones; zeros]
                                             bias block appended to the patches.
    w_ref   : (4, cp, 9*cp + 8)    f32 VMEM  BN/bias-folded im2col weights,
                                             tap-major, bias in column 9*cp.
    o_ref   : (cp, n_lanes)        f32 VMEM
    """

    def conv3x3(act, w, relu):
        # act: (cp, n_lanes).  Build the (9*cp + 8, n_lanes) patch matrix with
        # XLU lane rotations * precomputed halo masks, then ONE MXU matmul.
        taps = []
        t = 0
        for dy in (-1, 0, 1):
            for dx in (-1, 0, 1):
                delta = dy * W + dx                       # static python int
                if delta == 0:
                    rolled = act
                else:
                    # rolled[:, n] = act[:, (n + delta) mod n_lanes]
                    rolled = pltpu.roll(act, shift=(-delta) % n_lanes, axis=1)
                taps.append(rolled * aux_ref[pl.ds(t * cp, cp), :])
                t += 1
        taps.append(aux_ref[pl.ds(9 * cp, 8), :])         # bias [ones; zeros]
        patches = jnp.concatenate(taps, axis=0)           # (9*cp + 8, n_lanes)
        acc = jnp.dot(w, patches,
                      preferred_element_type=jnp.float32)  # (cp, n_lanes)
        if relu:
            acc = jnp.maximum(acc, 0.0)
        return acc

    a = x_ref[...]                                        # (cp, n_lanes)
    a = conv3x3(a, w_ref[0], True)
    a = conv3x3(a, w_ref[1], True)
    a = conv3x3(a, w_ref[2], True)
    a = conv3x3(a, w_ref[3], False)
    o_ref[...] = a.astype(o_ref.dtype)


class MergeMultiViewPallas:
    """JAX/Pallas re-implementation of MergeMultiView (inference mode)."""

    def __init__(self, nfeats, nviews=2, key=None, eps=1e-5):
        self.nfeats = nfeats
        self.nviews = nviews
        self.eps = eps
        if key is None:
            key = jax.random.PRNGKey(0)

        cins = [nviews * nfeats, nfeats, nfeats, nfeats]
        couts = [nfeats, nfeats, nfeats, nfeats * nviews]
        self.cins, self.couts = cins, couts

        # Single padded channel width for all layers (sublane multiple of 8
        # for f32).  Padded channels are exact zeros through the whole stack.
        self.cp = _round_up(max(cins + couts), 8)
        self.k_dim = 9 * self.cp + 8                      # 9 taps + bias block

        # Conv params in PyTorch OIHW layout (kept for the pure-JAX reference).
        self.w_oihw = []
        self.bias = []
        for i in range(4):
            key, kw, kb = jax.random.split(key, 3)
            fan_in = cins[i] * 9
            bound = 1.0 / (fan_in ** 0.5)
            w = jax.random.uniform(kw, (couts[i], cins[i], 3, 3),
                                   jnp.float32, -bound, bound)
            b = jax.random.uniform(kb, (couts[i],), jnp.float32, -bound, bound)
            self.w_oihw.append(w)
            self.bias.append(b)

        # BatchNorm2d eval-mode params (fresh PyTorch defaults) -> scale/shift.
        self.bn_scale = []
        self.bn_shift = []
        for i in range(3):
            gamma = jnp.ones((couts[i],), jnp.float32)
            beta = jnp.zeros((couts[i],), jnp.float32)
            run_mean = jnp.zeros((couts[i],), jnp.float32)
            run_var = jnp.ones((couts[i],), jnp.float32)
            scale = gamma / jnp.sqrt(run_var + eps)
            shift = beta - run_mean * scale
            self.bn_scale.append(scale)
            self.bn_shift.append(shift)

        # Fold conv-bias + BN into one packed, channel-padded weight operand:
        #   (conv_W(x) + b) * s + t  ==  conv_{W*s}(x) + (b*s + t)
        # Layout per layer: (cp, 9*cp + 8), tap-major ((kh,kw) outer, cin
        # inner); column 9*cp carries the folded bias (matched by the [ones;
        # zeros] patch block appended in-kernel); padded rows/cols are zero.
        w_all = jnp.zeros((4, self.cp, self.k_dim), jnp.float32)
        for i in range(4):
            if i < 3:
                s, t = self.bn_scale[i], self.bn_shift[i]
            else:
                s = jnp.ones((couts[i],), jnp.float32)
                t = jnp.zeros((couts[i],), jnp.float32)
            w_folded = self.w_oihw[i] * s[:, None, None, None]
            w_tap = jnp.transpose(w_folded, (0, 2, 3, 1)).reshape(
                couts[i], 9, cins[i])
            wk = jnp.zeros((self.cp, 9, self.cp), jnp.float32)
            wk = wk.at[:couts[i], :, :cins[i]].set(w_tap)
            wk = wk.reshape(self.cp, 9 * self.cp)
            b_fold = self.bias[i] * s + t
            bcol = jnp.zeros((self.cp, 8), jnp.float32).at[:couts[i], 0].set(b_fold)
            w_all = w_all.at[i].set(jnp.concatenate([wk, bcol], axis=1))
        self.w_all = w_all

    def _build_aux(self, H, W, bb):
        """(9*cp + 8, bb*H*W) halo masks (pre-broadcast) + bias block."""
        HW = H * W
        idx = jnp.arange(HW, dtype=jnp.int32)
        h_idx = idx // W
        w_idx = idx % W
        rows = []
        for dy in (-1, 0, 1):
            for dx in (-1, 0, 1):
                ok = ((h_idx + dy >= 0) & (h_idx + dy < H) &
                      (w_idx + dx >= 0) & (w_idx + dx < W))
                rows.append(ok.astype(jnp.float32))
        masks = jnp.stack(rows)                       # (9, HW)
        masks = jnp.tile(masks, (1, bb))              # (9, bb*HW): per-image
        masks = jnp.repeat(masks, self.cp, axis=0)    # (9*cp, bb*HW)
        bias_rows = jnp.zeros((8, bb * HW), jnp.float32).at[0].set(1.0)
        return jnp.concatenate([masks, bias_rows], axis=0)

    def __call__(self, x_nchw, num_batch_blocks=None):
        """x_nchw: (bs, nviews*nfeats, H, W) -> (bs, nfeats*nviews, H, W)."""
        B, C, H, W = x_nchw.shape
        assert C == self.cins[0], (C, self.cins[0])
        HW = H * W
        cp, kd = self.cp, self.k_dim
        cout = self.couts[3]

        g = (num_batch_blocks if num_batch_blocks is not None
             else _default_batch_blocks(B, HW))
        if g > 1 and (B % g != 0 or ((B // g) * HW) % 128 != 0):
            g = 1
        bb = B // g
        nb = bb * HW                                   # lanes per grid step
        ntot = B * HW

        # (B, C, H, W) -> (cp, B*HW): channel zero-pad + channel-major fold of
        # batch into the lane axis (cheap XLA reshuffles at the boundary).
        x3 = x_nchw.reshape(B, C, HW).astype(jnp.float32)
        if C < cp:
            x3 = jnp.pad(x3, ((0, 0), (0, cp - C), (0, 0)))
        x_k = jnp.transpose(x3, (1, 0, 2)).reshape(cp, ntot)

        aux = self._build_aux(H, W, bb)                # (9*cp + 8, nb)

        kern = functools.partial(_merge_kernel, W=W, n_lanes=nb, cp=cp)
        flops = 4 * 2 * cp * kd * ntot
        bytes_accessed = 4 * (2 * cp * ntot + 4 * cp * kd + (9 * cp + 8) * nb)

        out = pl.pallas_call(
            kern,
            out_shape=jax.ShapeDtypeStruct((cp, ntot), jnp.float32),
            grid=(g,),
            in_specs=[
                pl.BlockSpec((cp, nb), lambda i: (0, i)),           # x
                pl.BlockSpec((9 * cp + 8, nb), lambda i: (0, 0)),   # masks+bias
                pl.BlockSpec((4, cp, kd), lambda i: (0, 0, 0)),     # weights
            ],
            out_specs=pl.BlockSpec((cp, nb), lambda i: (0, i)),
            compiler_params=pltpu.CompilerParams(
                dimension_semantics=("parallel",)),
            cost_estimate=pl.CostEstimate(
                flops=int(flops), transcendentals=0,
                bytes_accessed=int(bytes_accessed)),
        )(x_k, aux, self.w_all)

        y = out.reshape(cp, B, HW)
        y = jnp.transpose(y, (1, 0, 2))[:, :cout]      # drop padded channels
        return y.reshape(B, cout, H, W)

    def reference(self, x_nchw):
        """Pure-JAX (XLA) reference of the same inference forward pass."""
        y = x_nchw.astype(jnp.float32)
        for i in range(4):
            y = jax.lax.conv_general_dilated(
                y, self.w_oihw[i], window_strides=(1, 1),
                padding=((1, 1), (1, 1)),
                dimension_numbers=('NCHW', 'OIHW', 'NCHW'))
            y = y + self.bias[i][None, :, None, None]
            if i < 3:
                y = (y * self.bn_scale[i][None, :, None, None]
                     + self.bn_shift[i][None, :, None, None])
                y = jnp.maximum(y, 0.0)
        return y


if __name__ == "__main__":
    nfeats, nviews = 4, 2
    B, H, W = 2, 16, 16

    key = jax.random.PRNGKey(0)
    kparams, kx = jax.random.split(key)

    model = MergeMultiViewPallas(nfeats, nviews, key=kparams)
    x = jax.random.normal(kx, (B, nviews * nfeats, H, W), jnp.float32)

    y = jax.block_until_ready(model(x))
    assert y.shape == (B, nfeats * nviews, H, W), y.shape
    assert y.dtype == jnp.float32
    assert bool(jnp.all(jnp.isfinite(y)))

    # Numerical check against the pure-JAX reference of the same forward pass.
    y_ref = jax.block_until_ready(model.reference(x))
    max_err = float(jnp.max(jnp.abs(y - y_ref)))
    assert max_err < 1e-4, f"max abs err vs reference: {max_err}"

    print("KERNEL_OK")
</pallas_src>

<mosaic_0001>
module attributes {stable_mosaic.version = 11 : i64} {
  func.func @_merge_kernel(%arg0: i32, %arg1: memref<8x512xf32, #tpu.memory_space<vmem>>, %arg2: memref<80x512xf32, #tpu.memory_space<vmem>>, %arg3: memref<4x8x80xf32, #tpu.memory_space<vmem>>, %arg4: memref<8x512xf32, #tpu.memory_space<vmem>>) attributes {dimension_semantics = [#tpu.dimension_semantics<parallel>], iteration_bounds = array<i64: 1>, scalar_prefetch = 0 : i64, scratch_operands = 0 : i64, tpu.core_type = #tpu.core_type<tc>, window_params = [{transform_indices = @transform_0, window_bounds = array<i64: 8, 512>}, {pipeline_mode = #tpu.pipeline_mode<synchronous>, transform_indices = @transform_1, window_bounds = array<i64: 80, 512>}, {pipeline_mode = #tpu.pipeline_mode<synchronous>, transform_indices = @transform_2, window_bounds = array<i64: 4, 8, 80>}, {transform_indices = @transform_3, window_bounds = array<i64: 8, 512>}]} {
    %c0 = arith.constant 0 : index
    %c0_0 = arith.constant 0 : index
    %0 = vector.load %arg1[%c0, %c0_0] : memref<8x512xf32, #tpu.memory_space<vmem>>, vector<8x512xf32>
    %c0_1 = arith.constant 0 : index
    %c0_2 = arith.constant 0 : index
    %c0_3 = arith.constant 0 : index
    %1 = vector.load %arg3[%c0_1, %c0_2, %c0_3] : memref<4x8x80xf32, #tpu.memory_space<vmem>>, vector<1x8x80xf32>
    %2 = vector.shape_cast %1 : vector<1x8x80xf32> to vector<8x80xf32>
    %c17_i32 = arith.constant 17 : i32
    %3 = tpu.dynamic_rotate %0 by %c17_i32 dim 1 : vector<8x512xf32>, i32 -> vector<8x512xf32>
    %c0_4 = arith.constant 0 : index
    %c0_5 = arith.constant 0 : index
    %4 = vector.load %arg2[%c0_4, %c0_5] : memref<80x512xf32, #tpu.memory_space<vmem>>, vector<8x512xf32>
    %5 = arith.mulf %3, %4 : vector<8x512xf32>
    %c16_i32 = arith.constant 16 : i32
    %6 = tpu.dynamic_rotate %0 by %c16_i32 dim 1 : vector<8x512xf32>, i32 -> vector<8x512xf32>
    %c8 = arith.constant 8 : index
    %c0_6 = arith.constant 0 : index
    %7 = vector.load %arg2[%c8, %c0_6] : memref<80x512xf32, #tpu.memory_space<vmem>>, vector<8x512xf32>
    %8 = arith.mulf %6, %7 : vector<8x512xf32>
    %c15_i32 = arith.constant 15 : i32
    %9 = tpu.dynamic_rotate %0 by %c15_i32 dim 1 : vector<8x512xf32>, i32 -> vector<8x512xf32>
    %c16 = arith.constant 16 : index
    %c0_7 = arith.constant 0 : index
    %10 = vector.load %arg2[%c16, %c0_7] : memref<80x512xf32, #tpu.memory_space<vmem>>, vector<8x512xf32>
    %11 = arith.mulf %9, %10 : vector<8x512xf32>
    %c1_i32 = arith.constant 1 : i32
    %12 = tpu.dynamic_rotate %0 by %c1_i32 dim 1 : vector<8x512xf32>, i32 -> vector<8x512xf32>
    %c24 = arith.constant 24 : index
    %c0_8 = arith.constant 0 : index
    %13 = vector.load %arg2[%c24, %c0_8] : memref<80x512xf32, #tpu.memory_space<vmem>>, vector<8x512xf32>
    %14 = arith.mulf %12, %13 : vector<8x512xf32>
    %c32 = arith.constant 32 : index
    %c0_9 = arith.constant 0 : index
    %15 = vector.load %arg2[%c32, %c0_9] : memref<80x512xf32, #tpu.memory_space<vmem>>, vector<8x512xf32>
    %16 = arith.mulf %0, %15 : vector<8x512xf32>
    %c511_i32 = arith.constant 511 : i32
    %17 = tpu.dynamic_rotate %0 by %c511_i32 dim 1 : vector<8x512xf32>, i32 -> vector<8x512xf32>
    %c40 = arith.constant 40 : index
    %c0_10 = arith.constant 0 : index
    %18 = vector.load %arg2[%c40, %c0_10] : memref<80x512xf32, #tpu.memory_space<vmem>>, vector<8x512xf32>
    %19 = arith.mulf %17, %18 : vector<8x512xf32>
    %c497_i32 = arith.constant 497 : i32
    %20 = tpu.dynamic_rotate %0 by %c497_i32 dim 1 : vector<8x512xf32>, i32 -> vector<8x512xf32>
    %c48 = arith.constant 48 : index
    %c0_11 = arith.constant 0 : index
    %21 = vector.load %arg2[%c48, %c0_11] : memref<80x512xf32, #tpu.memory_space<vmem>>, vector<8x512xf32>
    %22 = arith.mulf %20, %21 : vector<8x512xf32>
    %c496_i32 = arith.constant 496 : i32
    %23 = tpu.dynamic_rotate %0 by %c496_i32 dim 1 : vector<8x512xf32>, i32 -> vector<8x512xf32>
    %c56 = arith.constant 56 : index
    %c0_12 = arith.constant 0 : index
    %24 = vector.load %arg2[%c56, %c0_12] : memref<80x512xf32, #tpu.memory_space<vmem>>, vector<8x512xf32>
    %25 = arith.mulf %23, %24 : vector<8x512xf32>
    %c495_i32 = arith.constant 495 : i32
    %26 = tpu.dynamic_rotate %0 by %c495_i32 dim 1 : vector<8x512xf32>, i32 -> vector<8x512xf32>
    %c64 = arith.constant 64 : index
    %c0_13 = arith.constant 0 : index
    %27 = vector.load %arg2[%c64, %c0_13] : memref<80x512xf32, #tpu.memory_space<vmem>>, vector<8x512xf32>
    %28 = arith.mulf %26, %27 : vector<8x512xf32>
    %c72 = arith.constant 72 : index
    %c0_14 = arith.constant 0 : index
    %29 = vector.load %arg2[%c72, %c0_14] : memref<80x512xf32, #tpu.memory_space<vmem>>, vector<8x512xf32>
    %30 = tpu.concatenate %5, %8, %11, %14, %16, %19, %22, %25, %28, %29 in 0 : vector<8x512xf32>, vector<8x512xf32>, vector<8x512xf32>, vector<8x512xf32>, vector<8x512xf32>, vector<8x512xf32>, vector<8x512xf32>, vector<8x512xf32>, vector<8x512xf32>, vector<8x512xf32> -> vector<80x512xf32>
    %cst = arith.constant dense<0.000000e+00> : vector<8x512xf32>
    %31 = tpu.matmul %2, %30, %cst {dimension_numbers = #tpu.dot_dimension_numbers<[1], [0], [0], [1], [0, 0, 1, 1], [], []>} : vector<8x80xf32>, vector<80x512xf32>, vector<8x512xf32> -> vector<8x512xf32>
    %cst_15 = arith.constant 0.000000e+00 : f32
    %32 = vector.broadcast %cst_15 : f32 to vector<8x512xf32>
    %33 = arith.maximumf %31, %32 : vector<8x512xf32>
    %c1 = arith.constant 1 : index
    %c0_16 = arith.constant 0 : index
    %c0_17 = arith.constant 0 : index
    %34 = vector.load %arg3[%c1, %c0_16, %c0_17] : memref<4x8x80xf32, #tpu.memory_space<vmem>>, vector<1x8x80xf32>
    %35 = vector.shape_cast %34 : vector<1x8x80xf32> to vector<8x80xf32>
    %c17_i32_18 = arith.constant 17 : i32
    %36 = tpu.dynamic_rotate %33 by %c17_i32_18 dim 1 : vector<8x512xf32>, i32 -> vector<8x512xf32>
    %c0_19 = arith.constant 0 : index
    %c0_20 = arith.constant 0 : index
    %37 = vector.load %arg2[%c0_19, %c0_20] : memref<80x512xf32, #tpu.memory_space<vmem>>, vector<8x512xf32>
    %38 = arith.mulf %36, %37 : vector<8x512xf32>
    %c16_i32_21 = arith.constant 16 : i32
    %39 = tpu.dynamic_rotate %33 by %c16_i32_21 dim 1 : vector<8x512xf32>, i32 -> vector<8x512xf32>
    %c8_22 = arith.constant 8 : index
    %c0_23 = arith.constant 0 : index
    %40 = vector.load %arg2[%c8_22, %c0_23] : memref<80x512xf32, #tpu.memory_space<vmem>>, vector<8x512xf32>
    %41 = arith.mulf %39, %40 : vector<8x512xf32>
    %c15_i32_24 = arith.constant 15 : i32
    %42 = tpu.dynamic_rotate %33 by %c15_i32_24 dim 1 : vector<8x512xf32>, i32 -> vector<8x512xf32>
    %c16_25 = arith.constant 16 : index
    %c0_26 = arith.constant 0 : index
    %43 = vector.load %arg2[%c16_25, %c0_26] : memref<80x512xf32, #tpu.memory_space<vmem>>, vector<8x512xf32>
    %44 = arith.mulf %42, %43 : vector<8x512xf32>
    %c1_i32_27 = arith.constant 1 : i32
    %45 = tpu.dynamic_rotate %33 by %c1_i32_27 dim 1 : vector<8x512xf32>, i32 -> vector<8x512xf32>
    %c24_28 = arith.constant 24 : index
    %c0_29 = arith.constant 0 : index
    %46 = vector.load %arg2[%c24_28, %c0_29] : memref<80x512xf32, #tpu.memory_space<vmem>>, vector<8x512xf32>
    %47 = arith.mulf %45, %46 : vector<8x512xf32>
    %c32_30 = arith.constant 32 : index
    %c0_31 = arith.constant 0 : index
    %48 = vector.load %arg2[%c32_30, %c0_31] : memref<80x512xf32, #tpu.memory_space<vmem>>, vector<8x512xf32>
    %49 = arith.mulf %33, %48 : vector<8x512xf32>
    %c511_i32_32 = arith.constant 511 : i32
    %50 = tpu.dynamic_rotate %33 by %c511_i32_32 dim 1 : vector<8x512xf32>, i32 -> vector<8x512xf32>
    %c40_33 = arith.constant 40 : index
    %c0_34 = arith.constant 0 : index
    %51 = vector.load %arg2[%c40_33, %c0_34] : memref<80x512xf32, #tpu.memory_space<vmem>>, vector<8x512xf32>
    %52 = arith.mulf %50, %51 : vector<8x512xf32>
    %c497_i32_35 = arith.constant 497 : i32
    %53 = tpu.dynamic_rotate %33 by %c497_i32_35 dim 1 : vector<8x512xf32>, i32 -> vector<8x512xf32>
    %c48_36 = arith.constant 48 : index
    %c0_37 = arith.constant 0 : index
    %54 = vector.load %arg2[%c48_36, %c0_37] : memref<80x512xf32, #tpu.memory_space<vmem>>, vector<8x512xf32>
    %55 = arith.mulf %53, %54 : vector<8x512xf32>
    %c496_i32_38 = arith.constant 496 : i32
    %56 = tpu.dynamic_rotate %33 by %c496_i32_38 dim 1 : vector<8x512xf32>, i32 -> vector<8x512xf32>
    %c56_39 = arith.constant 56 : index
    %c0_40 = arith.constant 0 : index
    %57 = vector.load %arg2[%c56_39, %c0_40] : memref<80x512xf32, #tpu.memory_space<vmem>>, vector<8x512xf32>
    %58 = arith.mulf %56, %57 : vector<8x512xf32>
    %c495_i32_41 = arith.constant 495 : i32
    %59 = tpu.dynamic_rotate %33 by %c495_i32_41 dim 1 : vector<8x512xf32>, i32 -> vector<8x512xf32>
    %c64_42 = arith.constant 64 : index
    %c0_43 = arith.constant 0 : index
    %60 = vector.load %arg2[%c64_42, %c0_43] : memref<80x512xf32, #tpu.memory_space<vmem>>, vector<8x512xf32>
    %61 = arith.mulf %59, %60 : vector<8x512xf32>
    %c72_44 = arith.constant 72 : index
    %c0_45 = arith.constant 0 : index
    %62 = vector.load %arg2[%c72_44, %c0_45] : memref<80x512xf32, #tpu.memory_space<vmem>>, vector<8x512xf32>
    %63 = tpu.concatenate %38, %41, %44, %47, %49, %52, %55, %58, %61, %62 in 0 : vector<8x512xf32>, vector<8x512xf32>, vector<8x512xf32>, vector<8x512xf32>, vector<8x512xf32>, vector<8x512xf32>, vector<8x512xf32>, vector<8x512xf32>, vector<8x512xf32>, vector<8x512xf32> -> vector<80x512xf32>
    %cst_46 = arith.constant dense<0.000000e+00> : vector<8x512xf32>
    %64 = tpu.matmul %35, %63, %cst_46 {dimension_numbers = #tpu.dot_dimension_numbers<[1], [0], [0], [1], [0, 0, 1, 1], [], []>} : vector<8x80xf32>, vector<80x512xf32>, vector<8x512xf32> -> vector<8x512xf32>
    %cst_47 = arith.constant 0.000000e+00 : f32
    %65 = vector.broadcast %cst_47 : f32 to vector<8x512xf32>
    %66 = arith.maximumf %64, %65 : vector<8x512xf32>
    %c2 = arith.constant 2 : index
    %c0_48 = arith.constant 0 : index
    %c0_49 = arith.constant 0 : index
    %67 = vector.load %arg3[%c2, %c0_48, %c0_49] : memref<4x8x80xf32, #tpu.memory_space<vmem>>, vector<1x8x80xf32>
    %68 = vector.shape_cast %67 : vector<1x8x80xf32> to vector<8x80xf32>
    %c17_i32_50 = arith.constant 17 : i32
    %69 = tpu.dynamic_rotate %66 by %c17_i32_50 dim 1 : vector<8x512xf32>, i32 -> vector<8x512xf32>
    %c0_51 = arith.constant 0 : index
    %c0_52 = arith.constant 0 : index
    %70 = vector.load %arg2[%c0_51, %c0_52] : memref<80x512xf32, #tpu.memory_space<vmem>>, vector<8x512xf32>
    %71 = arith.mulf %69, %70 : vector<8x512xf32>
    %c16_i32_53 = arith.constant 16 : i32
    %72 = tpu.dynamic_rotate %66 by %c16_i32_53 dim 1 : vector<8x512xf32>, i32 -> vector<8x512xf32>
    %c8_54 = arith.constant 8 : index
    %c0_55 = arith.constant 0 : index
    %73 = vector.load %arg2[%c8_54, %c0_55] : memref<80x512xf32, #tpu.memory_space<vmem>>, vector<8x512xf32>
    %74 = arith.mulf %72, %73 : vector<8x512xf32>
    %c15_i32_56 = arith.constant 15 : i32
    %75 = tpu.dynamic_rotate %66 by %c15_i32_56 dim 1 : vector<8x512xf32>, i32 -> vector<8x512xf32>
    %c16_57 = arith.constant 16 : index
    %c0_58 = arith.constant 0 : index
    %76 = vector.load %arg2[%c16_57, %c0_58] : memref<80x512xf32, #tpu.memory_space<vmem>>, vector<8x512xf32>
    %77 = arith.mulf %75, %76 : vector<8x512xf32>
    %c1_i32_59 = arith.constant 1 : i32
    %78 = tpu.dynamic_rotate %66 by %c1_i32_59 dim 1 : vector<8x512xf32>, i32 -> vector<8x512xf32>
    %c24_60 = arith.constant 24 : index
    %c0_61 = arith.constant 0 : index
    %79 = vector.load %arg2[%c24_60, %c0_61] : memref<80x512xf32, #tpu.memory_space<vmem>>, vector<8x512xf32>
    %80 = arith.mulf %78, %79 : vector<8x512xf32>
    %c32_62 = arith.constant 32 : index
    %c0_63 = arith.constant 0 : index
    %81 = vector.load %arg2[%c32_62, %c0_63] : memref<80x512xf32, #tpu.memory_space<vmem>>, vector<8x512xf32>
    %82 = arith.mulf %66, %81 : vector<8x512xf32>
    %c511_i32_64 = arith.constant 511 : i32
    %83 = tpu.dynamic_rotate %66 by %c511_i32_64 dim 1 : vector<8x512xf32>, i32 -> vector<8x512xf32>
    %c40_65 = arith.constant 40 : index
    %c0_66 = arith.constant 0 : index
    %84 = vector.load %arg2[%c40_65, %c0_66] : memref<80x512xf32, #tpu.memory_space<vmem>>, vector<8x512xf32>
    %85 = arith.mulf %83, %84 : vector<8x512xf32>
    %c497_i32_67 = arith.constant 497 : i32
    %86 = tpu.dynamic_rotate %66 by %c497_i32_67 dim 1 : vector<8x512xf32>, i32 -> vector<8x512xf32>
    %c48_68 = arith.constant 48 : index
    %c0_69 = arith.constant 0 : index
    %87 = vector.load %arg2[%c48_68, %c0_69] : memref<80x512xf32, #tpu.memory_space<vmem>>, vector<8x512xf32>
    %88 = arith.mulf %86, %87 : vector<8x512xf32>
    %c496_i32_70 = arith.constant 496 : i32
    %89 = tpu.dynamic_rotate %66 by %c496_i32_70 dim 1 : vector<8x512xf32>, i32 -> vector<8x512xf32>
    %c56_71 = arith.constant 56 : index
    %c0_72 = arith.constant 0 : index
    %90 = vector.load %arg2[%c56_71, %c0_72] : memref<80x512xf32, #tpu.memory_space<vmem>>, vector<8x512xf32>
    %91 = arith.mulf %89, %90 : vector<8x512xf32>
    %c495_i32_73 = arith.constant 495 : i32
    %92 = tpu.dynamic_rotate %66 by %c495_i32_73 dim 1 : vector<8x512xf32>, i32 -> vector<8x512xf32>
    %c64_74 = arith.constant 64 : index
    %c0_75 = arith.constant 0 : index
    %93 = vector.load %arg2[%c64_74, %c0_75] : memref<80x512xf32, #tpu.memory_space<vmem>>, vector<8x512xf32>
    %94 = arith.mulf %92, %93 : vector<8x512xf32>
    %c72_76 = arith.constant 72 : index
    %c0_77 = arith.constant 0 : index
    %95 = vector.load %arg2[%c72_76, %c0_77] : memref<80x512xf32, #tpu.memory_space<vmem>>, vector<8x512xf32>
    %96 = tpu.concatenate %71, %74, %77, %80, %82, %85, %88, %91, %94, %95 in 0 : vector<8x512xf32>, vector<8x512xf32>, vector<8x512xf32>, vector<8x512xf32>, vector<8x512xf32>, vector<8x512xf32>, vector<8x512xf32>, vector<8x512xf32>, vector<8x512xf32>, vector<8x512xf32> -> vector<80x512xf32>
    %cst_78 = arith.constant dense<0.000000e+00> : vector<8x512xf32>
    %97 = tpu.matmul %68, %96, %cst_78 {dimension_numbers = #tpu.dot_dimension_numbers<[1], [0], [0], [1], [0, 0, 1, 1], [], []>} : vector<8x80xf32>, vector<80x512xf32>, vector<8x512xf32> -> vector<8x512xf32>
    %cst_79 = arith.constant 0.000000e+00 : f32
    %98 = vector.broadcast %cst_79 : f32 to vector<8x512xf32>
    %99 = arith.maximumf %97, %98 : vector<8x512xf32>
    %c3 = arith.constant 3 : index
    %c0_80 = arith.constant 0 : index
    %c0_81 = arith.constant 0 : index
    %100 = vector.load %arg3[%c3, %c0_80, %c0_81] : memref<4x8x80xf32, #tpu.memory_space<vmem>>, vector<1x8x80xf32>
    %101 = vector.shape_cast %100 : vector<1x8x80xf32> to vector<8x80xf32>
    %c17_i32_82 = arith.constant 17 : i32
    %102 = tpu.dynamic_rotate %99 by %c17_i32_82 dim 1 : vector<8x512xf32>, i32 -> vector<8x512xf32>
    %c0_83 = arith.constant 0 : index
    %c0_84 = arith.constant 0 : index
    %103 = vector.load %arg2[%c0_83, %c0_84] : memref<80x512xf32, #tpu.memory_space<vmem>>, vector<8x512xf32>
    %104 = arith.mulf %102, %103 : vector<8x512xf32>
    %c16_i32_85 = arith.constant 16 : i32
    %105 = tpu.dynamic_rotate %99 by %c16_i32_85 dim 1 : vector<8x512xf32>, i32 -> vector<8x512xf32>
    %c8_86 = arith.constant 8 : index
    %c0_87 = arith.constant 0 : index
    %106 = vector.load %arg2[%c8_86, %c0_87] : memref<80x512xf32, #tpu.memory_space<vmem>>, vector<8x512xf32>
    %107 = arith.mulf %105, %106 : vector<8x512xf32>
    %c15_i32_88 = arith.constant 15 : i32
    %108 = tpu.dynamic_rotate %99 by %c15_i32_88 dim 1 : vector<8x512xf32>, i32 -> vector<8x512xf32>
    %c16_89 = arith.constant 16 : index
    %c0_90 = arith.constant 0 : index
    %109 = vector.load %arg2[%c16_89, %c0_90] : memref<80x512xf32, #tpu.memory_space<vmem>>, vector<8x512xf32>
    %110 = arith.mulf %108, %109 : vector<8x512xf32>
    %c1_i32_91 = arith.constant 1 : i32
    %111 = tpu.dynamic_rotate %99 by %c1_i32_91 dim 1 : vector<8x512xf32>, i32 -> vector<8x512xf32>
    %c24_92 = arith.constant 24 : index
    %c0_93 = arith.constant 0 : index
    %112 = vector.load %arg2[%c24_92, %c0_93] : memref<80x512xf32, #tpu.memory_space<vmem>>, vector<8x512xf32>
    %113 = arith.mulf %111, %112 : vector<8x512xf32>
    %c32_94 = arith.constant 32 : index
    %c0_95 = arith.constant 0 : index
    %114 = vector.load %arg2[%c32_94, %c0_95] : memref<80x512xf32, #tpu.memory_space<vmem>>, vector<8x512xf32>
    %115 = arith.mulf %99, %114 : vector<8x512xf32>
    %c511_i32_96 = arith.constant 511 : i32
    %116 = tpu.dynamic_rotate %99 by %c511_i32_96 dim 1 : vector<8x512xf32>, i32 -> vector<8x512xf32>
    %c40_97 = arith.constant 40 : index
    %c0_98 = arith.constant 0 : index
    %117 = vector.load %arg2[%c40_97, %c0_98] : memref<80x512xf32, #tpu.memory_space<vmem>>, vector<8x512xf32>
    %118 = arith.mulf %116, %117 : vector<8x512xf32>
    %c497_i32_99 = arith.constant 497 : i32
    %119 = tpu.dynamic_rotate %99 by %c497_i32_99 dim 1 : vector<8x512xf32>, i32 -> vector<8x512xf32>
    %c48_100 = arith.constant 48 : index
    %c0_101 = arith.constant 0 : index
    %120 = vector.load %arg2[%c48_100, %c0_101] : memref<80x512xf32, #tpu.memory_space<vmem>>, vector<8x512xf32>
    %121 = arith.mulf %119, %120 : vector<8x512xf32>
    %c496_i32_102 = arith.constant 496 : i32
    %122 = tpu.dynamic_rotate %99 by %c496_i32_102 dim 1 : vector<8x512xf32>, i32 -> vector<8x512xf32>
    %c56_103 = arith.constant 56 : index
    %c0_104 = arith.constant 0 : index
    %123 = vector.load %arg2[%c56_103, %c0_104] : memref<80x512xf32, #tpu.memory_space<vmem>>, vector<8x512xf32>
    %124 = arith.mulf %122, %123 : vector<8x512xf32>
    %c495_i32_105 = arith.constant 495 : i32
    %125 = tpu.dynamic_rotate %99 by %c495_i32_105 dim 1 : vector<8x512xf32>, i32 -> vector<8x512xf32>
    %c64_106 = arith.constant 64 : index
    %c0_107 = arith.constant 0 : index
    %126 = vector.load %arg2[%c64_106, %c0_107] : memref<80x512xf32, #tpu.memory_space<vmem>>, vector<8x512xf32>
    %127 = arith.mulf %125, %126 : vector<8x512xf32>
    %c72_108 = arith.constant 72 : index
    %c0_109 = arith.constant 0 : index
    %128 = vector.load %arg2[%c72_108, %c0_109] : memref<80x512xf32, #tpu.memory_space<vmem>>, vector<8x512xf32>
    %129 = tpu.concatenate %104, %107, %110, %113, %115, %118, %121, %124, %127, %128 in 0 : vector<8x512xf32>, vector<8x512xf32>, vector<8x512xf32>, vector<8x512xf32>, vector<8x512xf32>, vector<8x512xf32>, vector<8x512xf32>, vector<8x512xf32>, vector<8x512xf32>, vector<8x512xf32> -> vector<80x512xf32>
    %cst_110 = arith.constant dense<0.000000e+00> : vector<8x512xf32>
    %130 = tpu.matmul %101, %129, %cst_110 {dimension_numbers = #tpu.dot_dimension_numbers<[1], [0], [0], [1], [0, 0, 1, 1], [], []>} : vector<8x80xf32>, vector<80x512xf32>, vector<8x512xf32> -> vector<8x512xf32>
    %c0_111 = arith.constant 0 : index
    %c0_112 = arith.constant 0 : index
    %131 = vector.load %arg4[%c0_111, %c0_112] : memref<8x512xf32, #tpu.memory_space<vmem>>, vector<8x512xf32>
    tpu.vector_store %arg4[%c0_111, %c0_112], %130 {strides = array<i32>} : memref<8x512xf32, #tpu.memory_space<vmem>>, vector<8x512xf32>,
    return
  }
  func.func @transform_0(%arg0: i32) -> (i32, i32) {
    %c0_i32 = arith.constant 0 : i32
    %c0_i32_0 = arith.constant 0 : i32
    return %c0_i32, %arg0 : i32, i32
  }
  func.func @transform_1(%arg0: i32) -> (i32, i32) {
    %c0_i32 = arith.constant 0 : i32
    %c0_i32_0 = arith.constant 0 : i32
    %c0_i32_1 = arith.constant 0 : i32
    return %c0_i32, %c0_i32_0 : i32, i32
  }
  func.func @transform_2(%arg0: i32) -> (i32, i32, i32) {
    %c0_i32 = arith.constant 0 : i32
    %c0_i32_0 = arith.constant 0 : i32
    %c0_i32_1 = arith.constant 0 : i32
    %c0_i32_2 = arith.constant 0 : i32
    return %c0_i32, %c0_i32_0, %c0_i32_1 : i32, i32, i32
  }
  func.func @transform_3(%arg0: i32) -> (i32, i32) {
    %c0_i32 = arith.constant 0 : i32
    %c0_i32_0 = arith.constant 0 : i32
    return %c0_i32, %arg0 : i32, i32
  }
}

</mosaic_0001>

<bundles_post_ra>
// kernel: tpu_custom_call.1
= control target key start
LH: loop header
LB: loop body
LE: loop exit
PB: predicated region body
PF: predicated region fallthrough
CT: control target
= control target key end

     0   :  { %8 = vsyncpa [#allocation3], 0  ;;  %s2446_s0 = inlined_call_operand.hbm [shape: f32[8,512], index: 0, kind: input, shape index: {}]   ;;  %s2447_s1 = inlined_call_operand.hbm [shape: f32[80,512], index: 1, kind: input, shape index: {}]   ;;  %s2448_s2 = inlined_call_operand.hbm [shape: f32[4,8,80], index: 2, kind: input, shape index: {}]   ;;  %s2449_s3 = inlined_call_operand.hbm [shape: f32[8,512], index: 3, kind: output, shape index: {}]  }
   0x1   :  { %9 = vsyncpa [#allocation6], 0 }
   0x2   :  { %10 = vsyncpa [#allocation4], 0  ;;  %s1575_s12 = smov [#allocation5]   ;;  %s1481_s16 = scalar_lea.hbm %s2447_s1, 5120 }
   0x3   :  { %s26_s13 = sshll.u32 %s1575_s12, 4  ;;  %p1482_p0 = scmp.ne.s32.totalorder %s2447_s1, %s1481_s16  ;;  %s27_s13 = int_to_ptr.vmem [resolvable:$true] %s26_s13 }
   0x4   :  { %p1485_p1 = scmp.lt.u32.totalorder %s1481_s16, %s2447_s1 }
   0x6   :  { %p1487_p2 = pnand %p1485_p1, %p1482_p0 }
   0x8   :  { %1490 = shalt.err (!%p1487_p2)
}
   0x9   :  { %s1491_s21 = scalar_lea.vmem %s27_s13, 5120  ;;  %p1496_p4 = scmp.lt.s32.totalorder %s27_s13, %s27_s13 }
   0xa   :  { %p1492_p3 = scmp.ne.s32.totalorder %s27_s13, %s1491_s21  ;;  %p1497_p5 = scmp.lt.s32.totalorder %s1491_s21, %s1491_s21 }
   0xc   :  { %p1498_p6 = por %p1497_p5, %p1496_p4 }
   0xe   :  { %p1499_p7 = pnand %p1498_p6, %p1492_p3 }
  0x10   :  { %1502 = shalt.err (!%p1499_p7)
}
  0x11   :  { %s1576_s22 = smov 512   ;;  %s1577_s23 = smov 32  }
  0x12   :  { %32 = dma.hbm_to_vmem [thread:$0]  %s2447_s1, 5120, %s27_s13, [#allocation6], %s1576_s22, %s1576_s22, %s1577_s23  }
  0x13   :  { %s1578_s26 = smov [#allocation2]   ;;  %s1579_s28 = smov [#allocation7]  }
  0x14   :  { %s17_s27 = sshll.u32 %s1578_s26, 4  ;;  %s38_s29 = sshll.u32 %s1579_s28, 4  ;;  %s18_s27 = int_to_ptr.vmem [resolvable:$true] %s17_s27  ;;  %s39_s29 = int_to_ptr.vmem [resolvable:$true] %s38_s29 }
  0x15   :  { %s1503_s5 = scalar_lea.hbm %s2446_s0, 512 }
  0x16   :  { %p1504_p8 = scmp.ne.s32.totalorder %s2446_s0, %s1503_s5  ;;  %p1507_p9 = scmp.lt.u32.totalorder %s1503_s5, %s2446_s0 }
  0x18   :  { %p1509_p10 = pnand %p1507_p9, %p1504_p8 }
  0x1a   :  { %1512 = shalt.err (!%p1509_p10)
}
  0x1b   :  { %s1513_s1 = scalar_lea.vmem %s18_s27, 512  ;;  %p1518_p12 = scmp.lt.s32.totalorder %s18_s27, %s18_s27 }
  0x1c   :  { %p1514_p11 = scmp.ne.s32.totalorder %s18_s27, %s1513_s1  ;;  %p1519_p13 = scmp.lt.s32.totalorder %s1513_s1, %s1513_s1 }
  0x1e   :  { %p1520_p0 = por %p1519_p13, %p1518_p12 }
  0x20   :  { %p1521_p1 = pnand %p1520_p0, %p1514_p11 }
  0x22   :  { %1524 = shalt.err (!%p1521_p1)
}
  0x23   :  { %20 = dma.hbm_to_vmem [thread:$0]  %s2446_s0, 512, %s18_s27, [#allocation3]  }
  0x24   :  { %s1525_s14 = scalar_lea.hbm %s2448_s2, 512 }
  0x25   :  { %p1526_p2 = scmp.ne.s32.totalorder %s2448_s2, %s1525_s14  ;;  %p1529_p3 = scmp.lt.u32.totalorder %s1525_s14, %s2448_s2 }
  0x27   :  { %p1531_p4 = pnand %p1529_p3, %p1526_p2 }
  0x29   :  { %1534 = shalt.err (!%p1531_p4)
}
  0x2a   :  { %s1535_s19 = scalar_lea.vmem %s39_s29, 512  ;;  %p1540_p6 = scmp.lt.s32.totalorder %s39_s29, %s39_s29 }
  0x2b   :  { %p1536_p5 = scmp.ne.s32.totalorder %s39_s29, %s1535_s19  ;;  %p1541_p7 = scmp.lt.s32.totalorder %s1535_s19, %s1535_s19 }
  0x2d   :  { %p1542_p8 = por %p1541_p7, %p1540_p6 }
  0x2f   :  { %p1543_p9 = pnand %p1542_p8, %p1536_p5 }
  0x31   :  { %1546 = shalt.err (!%p1543_p9)
}
  0x32   :  { %s1580_s0 = smov 128   ;;  %s1581_s20 = smov 8  }
  0x33   :  { %44 = dma.hbm_to_vmem [thread:$0]  %s2448_s2, 512, %s39_s29, [#allocation6], %s1580_s0, %s1580_s0, %s1581_s20  }
  0x34   :  { %1569 = dma.done.wait [#allocation3], 512  }
  0x35   :  { %1570 = vsyncadd [#allocation3], 4294966784 }
  0x36   :  { %1571 = dma.done.wait [#allocation6], 5632  }
  0x37   :  { %1572 = vsyncadd [#allocation6], 4294961664  ;;  %v1648_v0 = vld [vmem:[#allocation2 + $0x10] sm:$0xff]  ;;  %v1650_v1 = vld [vmem:[#allocation2] sm:$0xff]  ;;  %s1582_s23 = smov 17   ;;  %s1583_s2 = smov 16   ;;  %v67_v5 = vlaneseq }
  0x38   :  { %63 = vrot.lane.b32.xlu1 %v1648_v0, %s1582_s23  ;;  %59 = vrot.lane.b32.xlu0 %v1650_v1, %s1582_s23  ;;  %v1656_v2 = vld [vmem:[#allocation2 + $0x18] sm:$0xff]  ;;  %v1658_v3 = vld [vmem:[#allocation2 + $0x8] sm:$0xff]  ;;  %s1584_s24 = smov 15   ;;  %s1585_s25 = smov 1   ;;  %v2450_v4 = vmov 0.0   ;;  %v1736_v18 = vld [vmem:[#allocation5] sm:$0xff] }
  0x39   :  { %s1586_s26 = smov 127   ;;  %s1587_s27 = smov 113   ;;  %309 = vmatprep.mubr.f32.mxu0 %v2450_v4  ;;  %380 = vmatprep.mubr.f32.mxu1 %v2450_v4  ;;  %v1722_v8 = vand.u32 127, %v67_v5  ;;  %v1728_v12 = vld [vmem:[#allocation5 + $0x8] sm:$0xff]  ;;  %v1740_v21 = vld [vmem:[#allocation5 + $0x20] sm:$0xff]  ;;  %v1744_v23 = vld [vmem:[#allocation5 + $0x18] sm:$0xff] }
  0x3a   :  { %s1588_s28 = smov 112   ;;  %s1590_s29 = smov 111   ;;  %v1730_v13 = vld [vmem:[#allocation5 + $0x28] sm:$0xff]  ;;  %v1748_v25 = vld [vmem:[#allocation5 + $0x38] sm:$0xff]  ;;  %v1750_v26 = vld [vmem:[#allocation5 + $0x10] sm:$0xff]  ;;  %vm241_vm8 = vcmask 654336  }
  0x3b   :  { %vm69_vm0 = vcmp.lt.s32.totalorder %v1722_v8, 17  ;;  %vm90_vm1 = vcmp.lt.s32.totalorder %v1722_v8, 16  ;;  %v1752_v27 = vld [vmem:[#allocation5 + $0x30] sm:$0xff]  ;;  %vm111_vm2 = vcmp.lt.s32.totalorder %v1722_v8, 15  ;;  %vm132_vm3 = vcmp.lt.s32.totalorder %v1722_v8, 1  ;;  %v1768_v47 = vld [vmem:[#allocation5 + $0x48] sm:$0xff] }
  0x3c   :  { %65 = vrot.lane.b32.xlu1 %v1656_v2, %s1582_s23  ;;  %61 = vrot.lane.b32.xlu0 %v1658_v3, %s1582_s23  ;;  %2453 = vst [vmem:[#allocation12_spill] sm:$0xff] %v1752_v27  ;;  %v1772_v49 = vld [vmem:[#allocation5 + $0x68] sm:$0xff]  ;;  %v1774_v52 = vld [vmem:[#allocation5 + $0x40] sm:$0xff]  ;;  %v1781_v56 = vld [vmem:[#allocation5 + $0x50] sm:$0xff]  ;;  %vm161_vm4 = vcmp.lt.s32.totalorder %v1722_v8, 127  ;;  %vm203_vm5 = vcmp.lt.s32.totalorder %v1722_v8, 112 }
  0x3d   :  { %v1783_v57 = vld [vmem:[#allocation5 + $0x58] sm:$0xff]  ;;  %v1790_v61 = vld [vmem:[#allocation5 + $0x60] sm:$0xff]  ;;  %v1792_v62 = vld [vmem:[#allocation5 + $0x70] sm:$0xff]  ;;  %vm182_vm6 = vcmp.lt.s32.totalorder %v1722_v8, 113  ;;  %vm224_vm7 = vcmp.lt.s32.totalorder %v1722_v8, 111  ;;  %s1591_s30 = smov [#allocation8]  }
  0x3e   :  { %v1794_v63 = vld [vmem:[#allocation5 + $0x78] sm:$0xff]  ;;  %s1246_s4 = sshll.u32 %s1591_s30, 4  ;;  %s1247_s4 = int_to_ptr.vmem [resolvable:$true] %s1246_s4 }
  0x3f   :  { %s1547_s5 = scalar_lea.vmem %s1247_s4, 512  ;;  %p1552_p11 = scmp.lt.s32.totalorder %s1247_s4, %s1247_s4 }
  0x40   :  { %84 = vrot.lane.b32.xlu1 %v1658_v3, %s1583_s2  ;;  %82 = vrot.lane.b32.xlu0 %v1650_v1, %s1583_s2  ;;  %p1548_p10 = scmp.ne.s32.totalorder %s1247_s4, %s1547_s5  ;;  %p1553_p12 = scmp.lt.s32.totalorder %s1547_s5, %s1547_s5 }
  0x42   :  { %p1554_p13 = por %p1553_p12, %p1552_p11 }
  0x44   :  { %88 = vrot.lane.b32.xlu1 %v1656_v2, %s1583_s2  ;;  %86 = vrot.lane.b32.xlu0 %v1648_v0, %s1583_s2  ;;  %p1555_p0 = pnand %p1554_p13, %p1548_p10 }
  0x48   :  { %105 = vrot.lane.b32.xlu1 %v1658_v3, %s1584_s24  ;;  %103 = vrot.lane.b32.xlu0 %v1650_v1, %s1584_s24 }
  0x4c   :  { %109 = vrot.lane.b32.xlu1 %v1656_v2, %s1584_s24  ;;  %107 = vrot.lane.b32.xlu0 %v1648_v0, %s1584_s24 }
  0x50   :  { %126 = vrot.lane.b32.xlu1 %v1658_v3, %s1585_s25  ;;  %124 = vrot.lane.b32.xlu0 %v1650_v1, %s1585_s25 }
  0x54   :  { %130 = vrot.lane.b32.xlu1 %v1656_v2, %s1585_s25  ;;  %128 = vrot.lane.b32.xlu0 %v1648_v0, %s1585_s25 }
  0x58   :  { %155 = vrot.lane.b32.xlu1 %v1658_v3, %s1586_s26  ;;  %153 = vrot.lane.b32.xlu0 %v1650_v1, %s1586_s26 }
  0x5c   :  { %159 = vrot.lane.b32.xlu1 %v1656_v2, %s1586_s26  ;;  %157 = vrot.lane.b32.xlu0 %v1648_v0, %s1586_s26 }
  0x60   :  { %176 = vrot.lane.b32.xlu1 %v1658_v3, %s1587_s27  ;;  %174 = vrot.lane.b32.xlu0 %v1650_v1, %s1587_s27 }
  0x64   :  { %180 = vrot.lane.b32.xlu1 %v1656_v2, %s1587_s27  ;;  %178 = vrot.lane.b32.xlu0 %v1648_v0, %s1587_s27 }
  0x68   :  { %197 = vrot.lane.b32.xlu1 %v1658_v3, %s1588_s28  ;;  %195 = vrot.lane.b32.xlu0 %v1650_v1, %s1588_s28 }
  0x6c   :  { %201 = vrot.lane.b32.xlu1 %v1656_v2, %s1588_s28  ;;  %199 = vrot.lane.b32.xlu0 %v1648_v0, %s1588_s28 }
  0x70   :  { %218 = vrot.lane.b32.xlu1 %v1658_v3, %s1590_s29  ;;  %216 = vrot.lane.b32.xlu0 %v1650_v1, %s1590_s29 }
  0x74   :  { %222 = vrot.lane.b32.xlu1 %v1656_v2, %s1590_s29  ;;  %220 = vrot.lane.b32.xlu0 %v1648_v0, %s1590_s29 }
  0xaa   :  { %v64_v6 = vpop.permute.xlu1 %63  ;;  %v60_v7 = vpop.permute.xlu0 %59 }
  0xae   :  { %v66_v9 = vpop.permute.xlu1 %65  ;;  %v62_v10 = vpop.permute.xlu0 %61 }
  0xaf   :  { %v72_v11 = vsel %vm69_vm0, %v60_v7, %v62_v10  ;;  %v73_v16 = vsel %vm69_vm0, %v66_v9, %v60_v7  ;;  %v70_v22 = vsel %vm69_vm0, %v64_v6, %v66_v9  ;;  %v71_v24 = vsel %vm69_vm0, %v62_v10, %v64_v6 }
  0xb0   :  { %v79_v19 = vmul.f32 %v1728_v12, %v72_v11  ;;  %v78_v31 = vmul.f32 %v1736_v18, %v73_v16  ;;  %v81_v34 = vmul.f32 %v1744_v23, %v70_v22  ;;  %v80_v38 = vmul.f32 %v1750_v26, %v71_v24 }
  0xb2   :  { %v85_v14 = vpop.permute.xlu1 %84  ;;  %v83_v15 = vpop.permute.xlu0 %82 }
  0xb3   :  { %v93_v17 = vsel %vm90_vm1, %v83_v15, %v85_v14 }
  0xb4   :  { %v100_v20 = vmul.f32 %v1730_v13, %v93_v17 }
  0xb6   :  { %v89_v28 = vpop.permute.xlu1 %88  ;;  %v87_v29 = vpop.permute.xlu0 %86  ;;  %v1264_v30 = vpack.c.bf16 %v100_v20, %v79_v19 }
  0xb7   :  { %v94_v32 = vsel %vm90_vm1, %v89_v28, %v83_v15  ;;  %v92_v33 = vsel %vm90_vm1, %v85_v14, %v87_v29  ;;  %v91_v35 = vsel %vm90_vm1, %v87_v29, %v89_v28 }
  0xb8   :  { %1265 = vmatprep.subr.bf16.mxu0 %v1264_v30  ;;  %v99_v36 = vmul.f32 %v1740_v21, %v94_v32  ;;  %v102_v37 = vmul.f32 %v1748_v25, %v91_v35  ;;  %v101_v39 = vmul.f32 %v1752_v27, %v92_v33  ;;  %v1811_v32 = vld [vmem:[#allocation5 + $0x88] sm:$0xff]  ;;  %v1813_v33 = vld [vmem:[#allocation5 + $0x98] sm:$0xff]  ;;  %v1817_v35 = vld [vmem:[#allocation5 + $0xa0] sm:$0xff] }
  0xba   :  { %v106_v40 = vpop.permute.xlu1 %105  ;;  %v104_v41 = vpop.permute.xlu0 %103  ;;  %v1266_v42 = vpack.c.bf16 %v99_v36, %v78_v31  ;;  %v1284_v43 = vpack.c.bf16 %v102_v37, %v81_v34  ;;  %v1286_v44 = vpack.c.bf16 %v101_v39, %v80_v38  ;;  %v1809_v31 = vld [vmem:[#allocation5 + $0x80] sm:$0xff]  ;;  %v1815_v34 = vld [vmem:[#allocation5 + $0x90] sm:$0xff]  ;;  %v1821_v37 = vld [vmem:[#allocation5 + $0xb8] sm:$0xff] }
  0xbb   :  { %v114_v48 = vsel %vm111_vm2, %v104_v41, %v106_v40  ;;  %v1823_v38 = vld [vmem:[#allocation5 + $0xa8] sm:$0xff]  ;;  %v1825_v39 = vld [vmem:[#allocation5 + $0xb0] sm:$0xff] }
  0xbc   :  { %1267 = vmatpush1.bf16.msra.mxu0 %v1266_v42  ;;  %1285 = vmatprep.subr.bf16.mxu1 %v1284_v43  ;;  %v121_v55 = vmul.f32 %v1768_v47, %v114_v48  ;;  %v150_v42 = vmul.f32 %v1811_v32, %v1658_v3  ;;  %v152_v43 = vmul.f32 %v1813_v33, %v1656_v2 }
  0xbd   :  { %1287 = vmatpush1.bf16.msra.mxu1 %v1286_v44  ;;  %v149_v44 = vmul.f32 %v1809_v31, %v1650_v1 }
  0xbe   :  { %v110_v45 = vpop.permute.xlu1 %109  ;;  %v108_v46 = vpop.permute.xlu0 %107 }
  0xbf   :  { %v115_v53 = vsel %vm111_vm2, %v110_v45, %v104_v41  ;;  %v113_v58 = vsel %vm111_vm2, %v106_v40, %v108_v46  ;;  %v112_v60 = vsel %vm111_vm2, %v108_v46, %v110_v45  ;;  %v151_v45 = vmul.f32 %v1815_v34, %v1648_v0 }
  0xc0   :  { %v120_v5 = vmul.f32 %v1774_v52, %v115_v53  ;;  %v122_v10 = vmul.f32 %v1781_v56, %v113_v58  ;;  %v123_v16 = vmul.f32 %v1783_v57, %v112_v60 }
  0xc2   :  { %v127_v50 = vpop.permute.xlu1 %126  ;;  %v125_v51 = vpop.permute.xlu0 %124 }
  0xc3   :  { %v135_v54 = vsel %vm132_vm3, %v125_v51, %v127_v50 }
  0xc4   :  { %v142_v59 = vmul.f32 %v1772_v49, %v135_v54 }
  0xc6   :  { %v131_v6 = vpop.permute.xlu1 %130  ;;  %v129_v7 = vpop.permute.xlu0 %128  ;;  %v1268_v9 = vpack.c.bf16 %v142_v59, %v121_v55 }
  0xc7   :  { %v136_v11 = vsel %vm132_vm3, %v131_v6, %v125_v51  ;;  %v133_v14 = vsel %vm132_vm3, %v129_v7, %v131_v6  ;;  %v134_v15 = vsel %vm132_vm3, %v127_v50, %v129_v7 }
  0xc8   :  { %v141_v17 = vmul.f32 %v1790_v61, %v136_v11  ;;  %v143_v19 = vmul.f32 %v1792_v62, %v134_v15  ;;  %v144_v20 = vmul.f32 %v1794_v63, %v133_v14  ;;  %1269 = vmatprep.subr.bf16.mxu0 %v1268_v9  ;;  %v1847_v9 = vld [vmem:[#allocation5 + $0xd8] sm:$0xff]  ;;  %v1851_v11 = vld [vmem:[#allocation5 + $0xc8] sm:$0xff]  ;;  %v1855_v15 = vld [vmem:[#allocation5 + $0xd0] sm:$0xff] }
  0xca   :  { %v156_v22 = vpop.permute.xlu1 %155  ;;  %v154_v24 = vpop.permute.xlu0 %153  ;;  %v1270_v28 = vpack.c.bf16 %v141_v17, %v120_v5  ;;  %v1288_v29 = vpack.c.bf16 %v144_v20, %v123_v16  ;;  %v1290_v30 = vpack.c.bf16 %v143_v19, %v122_v10  ;;  %v1857_v16 = vld [vmem:[#allocation5 + $0xe0] sm:$0xff]  ;;  %v1863_v20 = vld [vmem:[#allocation5 + $0xf8] sm:$0xff] }
  0xcb   :  { %v164_v36 = vsel %vm161_vm4, %v154_v24, %v156_v22 }
  0xcc   :  { %1271 = vmatpush1.bf16.msra.mxu0 %v1270_v28  ;;  %1289 = vmatprep.subr.bf16.mxu1 %v1288_v29  ;;  %v170_v46 = vmul.f32 %v1817_v35, %v164_v36  ;;  %v1869_v28 = vld [vmem:[#allocation5 + $0xc0] sm:$0xff] }
  0xcd   :  { %1291 = vmatpush1.bf16.msra.mxu1 %v1290_v30 }
  0xce   :  { %v160_v40 = vpop.permute.xlu1 %159  ;;  %v158_v41 = vpop.permute.xlu0 %157  ;;  %v1274_v59 = vpack.c.bf16 %v170_v46, %v149_v44 }
  0xcf   :  { %v165_v48 = vsel %vm161_vm4, %v160_v40, %v154_v24  ;;  %v162_v50 = vsel %vm161_vm4, %v158_v41, %v160_v40  ;;  %v163_v3 = vsel %vm161_vm4, %v156_v22, %v158_v41  ;;  %v1865_v22 = vld [vmem:[#allocation5 + $0xe8] sm:$0xff]  ;;  %v1867_v24 = vld [vmem:[#allocation5 + $0xf0] sm:$0xff] }
  0xd0   :  { %v173_v51 = vmul.f32 %v1821_v37, %v165_v48  ;;  %v171_v2 = vmul.f32 %v1823_v38, %v163_v3  ;;  %v172_v1 = vmul.f32 %v1825_v39, %v162_v50 }
  0xd2   :  { %v177_v53 = vpop.permute.xlu1 %176  ;;  %v175_v54 = vpop.permute.xlu0 %174  ;;  %v1272_v0 = vpack.c.bf16 %v171_v2, %v150_v42  ;;  %v1292_v55 = vpack.c.bf16 %v173_v51, %v152_v43  ;;  %v1294_v58 = vpack.c.bf16 %v172_v1, %v151_v45 }
  0xd3   :  { %v185_v29 = vsel %vm182_vm6, %v175_v54, %v177_v53 }
  0xd4   :  { %1273 = vmatprep.subr.bf16.mxu0 %v1272_v0  ;;  %1293 = vmatprep.subr.bf16.mxu1 %v1292_v55  ;;  %v191_v51 = vmul.f32 %v1869_v28, %v185_v29 }
  0xd5   :  { %1275 = vmatpush1.bf16.msra.mxu0 %v1274_v59  ;;  %1295 = vmatpush1.bf16.msra.mxu1 %v1294_v58  ;;  %v1888_v58 = vld [vmem:[#allocation5 + $0x100] sm:$0xff] }
  0xd6   :  { %v181_v60 = vpop.permute.xlu1 %180  ;;  %v179_v5 = vpop.permute.xlu0 %178 }
  0xd7   :  { %v186_v10 = vsel %vm182_vm6, %v181_v60, %v175_v54  ;;  %v184_v14 = vsel %vm182_vm6, %v177_v53, %v179_v5  ;;  %v183_v19 = vsel %vm182_vm6, %v179_v5, %v181_v60  ;;  %v1892_v60 = vld [vmem:[#allocation5 + $0x118] sm:$0xff]  ;;  %v1894_v5 = vld [vmem:[#allocation5 + $0x108] sm:$0xff] }
  0xd8   :  { %v194_v30 = vmul.f32 %v1847_v9, %v186_v10  ;;  %v192_v36 = vmul.f32 %v1851_v11, %v184_v14  ;;  %v193_v46 = vmul.f32 %v1855_v15, %v183_v19 }
  0xda   :  { %v198_v6 = vpop.permute.xlu1 %197  ;;  %v196_v7 = vpop.permute.xlu0 %195 }
  0xdb   :  { %v206_v17 = vsel %vm203_vm5, %v196_v7, %v198_v6 }
  0xdc   :  { %v212_v42 = vmul.f32 %v1857_v16, %v206_v17 }
  0xde   :  { %v202_v40 = vpop.permute.xlu1 %201  ;;  %v200_v41 = vpop.permute.xlu0 %199  ;;  %v1278_v55 = vpack.c.bf16 %v212_v42, %v191_v51 }
  0xdf   :  { %v207_v43 = vsel %vm203_vm5, %v202_v40, %v196_v7  ;;  %v204_v44 = vsel %vm203_vm5, %v200_v41, %v202_v40  ;;  %v205_v45 = vsel %vm203_vm5, %v198_v6, %v200_v41  ;;  %v1896_v6 = vld [vmem:[#allocation5 + $0x110] sm:$0xff] }
  0xe0   :  { %v215_v48 = vmul.f32 %v1863_v20, %v207_v43  ;;  %v213_v50 = vmul.f32 %v1865_v22, %v205_v45  ;;  %v214_v3 = vmul.f32 %v1867_v24, %v204_v44  ;;  %v1909_v40 = vld [vmem:[#allocation5 + $0x130] sm:$0xff]  ;;  %v1914_v44 = vld [vmem:[#allocation5 + $0x120] sm:$0xff] }
  0xe2   :  { %v219_v2 = vpop.permute.xlu1 %218  ;;  %v217_v1 = vpop.permute.xlu0 %216  ;;  %v1276_v53 = vpack.c.bf16 %v213_v50, %v192_v36  ;;  %v1296_v54 = vpack.c.bf16 %v215_v48, %v194_v30  ;;  %v1298_v0 = vpack.c.bf16 %v214_v3, %v193_v46  ;;  %v1905_v30 = vld [vmem:[#allocation5 + $0x128] sm:$0xff]  ;;  %v1907_v36 = vld [vmem:[#allocation5 + $0x138] sm:$0xff]  ;;  %v58_v3 = vld [vmem:[#allocation7] sm:$0xff] }
  0xe3   :  { %v227_v59 = vsel %vm224_vm7, %v217_v1, %v219_v2 }
  0xe4   :  { %1277 = vmatprep.subr.bf16.mxu0 %v1276_v53  ;;  %1297 = vmatprep.subr.bf16.mxu1 %v1296_v54  ;;  %v233_v14 = vmul.f32 %v1888_v58, %v227_v59 }
  0xe5   :  { %1279 = vmatpush1.bf16.msra.mxu0 %v1278_v55  ;;  %1299 = vmatpush1.bf16.msra.mxu1 %v1298_v0 }
  0xe6   :  { %v223_v7 = vpop.permute.xlu1 %222  ;;  %v221_v10 = vpop.permute.xlu0 %220  ;;  %v1282_v50 = vpack.c.bf16 %v1914_v44, %v233_v14 }
  0xe7   :  { %v228_v17 = vsel %vm224_vm7, %v223_v7, %v217_v1  ;;  %v225_v19 = vsel %vm224_vm7, %v221_v10, %v223_v7  ;;  %v226_v29 = vsel %vm224_vm7, %v219_v2, %v221_v10 }
  0xe8   :  { %v236_v41 = vmul.f32 %v1892_v60, %v228_v17  ;;  %v234_v42 = vmul.f32 %v1894_v5, %v226_v29  ;;  %v235_v43 = vmul.f32 %v1896_v6, %v225_v19 }
  0xea   :  { %v1280_v45 = vpack.c.bf16 %v1905_v30, %v234_v42  ;;  %v1300_v46 = vpack.c.bf16 %v1907_v36, %v236_v41  ;;  %v1302_v48 = vpack.c.bf16 %v1909_v40, %v235_v43 }
  0xec   :  { %1281 = vmatprep.subr.bf16.mxu0 %v1280_v45  ;;  %1301 = vmatprep.subr.bf16.mxu1 %v1300_v46 }
  0xed   :  { %1283 = vmatpush1.bf16.msra.mxu0 %v1282_v50  ;;  %1303 = vmatpush1.bf16.msra.mxu1 %v1302_v48 }
  0xf0   :  { %1256 = vmatmul.mubr.msk.f32.vlgmr.msra.gmra.mrb[0].mxu0 %vm241_vm8, %v58_v3  ;;  %1257 = vmatmul.mubr.msk.f32.vlgmr.msra.gmra.mrb[0].mxu1 %vm241_vm8, %v58_v3 }
  0xf1   :  { %592 = vmatprep.mubr.f32.mxu0 %v2450_v4  ;;  %663 = vmatprep.mubr.f32.mxu1 %v2450_v4 }
 0x1c3   :  { %v311_v51 = vpop.f32.mrb[0].mxu0  ;;  %v382_v2 = vpop.f32.mrb[0].mxu1 }
 0x1c4   :  { %v1924_v1 = vmax.f32 %v311_v51, 0.0  ;;  %v313_v53 = vpop.f32.mrb[1].mxu0  ;;  %v384_v54 = vpop.f32.mrb[1].mxu1  ;;  %v1928_v55 = vmax.f32 %v382_v2, 0.0 }
 0x1c5   :  { %v1926_v0 = vmax.f32 %v313_v53, 0.0  ;;  %v1932_v59 = vmax.f32 %v384_v54, 0.0 }
 0x1c6   :  { %393 = vrot.lane.b32.xlu0 %v1924_v1, %s1582_s23 }
 0x1c7   :  { %395 = vrot.lane.b32.xlu1 %v1926_v0, %s1582_s23 }
 0x1ca   :  { %397 = vrot.lane.b32.xlu0 %v1928_v55, %s1582_s23 }
 0x1cb   :  { %399 = vrot.lane.b32.xlu1 %v1932_v59, %s1582_s23 }
 0x1ce   :  { %409 = vrot.lane.b32.xlu0 %v1924_v1, %s1583_s2 }
 0x1cf   :  { %411 = vrot.lane.b32.xlu1 %v1926_v0, %s1583_s2 }
 0x1d2   :  { %413 = vrot.lane.b32.xlu0 %v1928_v55, %s1583_s2 }
 0x1d3   :  { %415 = vrot.lane.b32.xlu1 %v1932_v59, %s1583_s2 }
 0x1d6   :  { %425 = vrot.lane.b32.xlu0 %v1924_v1, %s1584_s24 }
 0x1d7   :  { %427 = vrot.lane.b32.xlu1 %v1926_v0, %s1584_s24 }
 0x1da   :  { %429 = vrot.lane.b32.xlu0 %v1928_v55, %s1584_s24 }
 0x1db   :  { %431 = vrot.lane.b32.xlu1 %v1932_v59, %s1584_s24 }
 0x1de   :  { %441 = vrot.lane.b32.xlu0 %v1924_v1, %s1585_s25 }
 0x1df   :  { %443 = vrot.lane.b32.xlu1 %v1926_v0, %s1585_s25 }
 0x1e2   :  { %445 = vrot.lane.b32.xlu0 %v1928_v55, %s1585_s25 }
 0x1e3   :  { %447 = vrot.lane.b32.xlu1 %v1932_v59, %s1585_s25 }
 0x1e6   :  { %461 = vrot.lane.b32.xlu0 %v1924_v1, %s1586_s26 }
 0x1e7   :  { %463 = vrot.lane.b32.xlu1 %v1926_v0, %s1586_s26 }
 0x1ea   :  { %465 = vrot.lane.b32.xlu0 %v1928_v55, %s1586_s26 }
 0x1eb   :  { %467 = vrot.lane.b32.xlu1 %v1932_v59, %s1586_s26 }
 0x1ee   :  { %477 = vrot.lane.b32.xlu0 %v1924_v1, %s1587_s27 }
 0x1ef   :  { %479 = vrot.lane.b32.xlu1 %v1926_v0, %s1587_s27 }
 0x1f2   :  { %481 = vrot.lane.b32.xlu0 %v1928_v55, %s1587_s27 }
 0x1f3   :  { %483 = vrot.lane.b32.xlu1 %v1932_v59, %s1587_s27 }
 0x1f6   :  { %493 = vrot.lane.b32.xlu0 %v1924_v1, %s1588_s28 }
 0x1f7   :  { %495 = vrot.lane.b32.xlu1 %v1926_v0, %s1588_s28 }
 0x1fa   :  { %497 = vrot.lane.b32.xlu0 %v1928_v55, %s1588_s28 }
 0x1fb   :  { %499 = vrot.lane.b32.xlu1 %v1932_v59, %s1588_s28 }
 0x1fe   :  { %509 = vrot.lane.b32.xlu0 %v1924_v1, %s1590_s29 }
 0x1ff   :  { %511 = vrot.lane.b32.xlu1 %v1926_v0, %s1590_s29 }
 0x202   :  { %513 = vrot.lane.b32.xlu0 %v1928_v55, %s1590_s29 }
 0x203   :  { %515 = vrot.lane.b32.xlu1 %v1932_v59, %s1590_s29 }
 0x238   :  { %v394_v7 = vpop.permute.xlu0 %393 }
 0x239   :  { %v396_v10 = vpop.permute.xlu1 %395 }
 0x23a   :  { %v403_v19 = vsel %vm69_vm0, %v394_v7, %v396_v10 }
 0x23b   :  { %v406_v43 = vmul.f32 %v403_v19, %v1728_v12 }
 0x23c   :  { %v398_v14 = vpop.permute.xlu0 %397 }
 0x23d   :  { %v400_v17 = vpop.permute.xlu1 %399  ;;  %v402_v3 = vsel %vm69_vm0, %v396_v10, %v398_v14 }
 0x23e   :  { %v401_v46 = vsel %vm69_vm0, %v398_v14, %v400_v17  ;;  %v404_v48 = vsel %vm69_vm0, %v400_v17, %v394_v7  ;;  %v407_v14 = vmul.f32 %v402_v3, %v1750_v26 }
 0x23f   :  { %v405_v4 = vmul.f32 %v404_v48, %v1736_v18  ;;  %v408_v7 = vmul.f32 %v401_v46, %v1744_v23 }
 0x240   :  { %v410_v29 = vpop.permute.xlu0 %409 }
 0x241   :  { %v412_v41 = vpop.permute.xlu1 %411 }
 0x242   :  { %v419_v42 = vsel %vm90_vm1, %v410_v29, %v412_v41 }
 0x243   :  { %v422_v45 = vmul.f32 %v419_v42, %v1730_v13 }
 0x244   :  { %v414_v50 = vpop.permute.xlu0 %413 }
 0x245   :  { %v418_v51 = vsel %vm90_vm1, %v412_v41, %v414_v50  ;;  %v416_v2 = vpop.permute.xlu1 %415  ;;  %v1304_v53 = vpack.c.bf16 %v422_v45, %v406_v43 }
 0x246   :  { %v423_v54 = vmul.f32 %v418_v51, %v1752_v27  ;;  %v417_v19 = vsel %vm90_vm1, %v414_v50, %v416_v2  ;;  %v420_v42 = vsel %vm90_vm1, %v416_v2, %v410_v29 }
 0x247   :  { %v421_v17 = vmul.f32 %v420_v42, %v1740_v21  ;;  %v424_v10 = vmul.f32 %v417_v19, %v1748_v25  ;;  %1305 = vmatprep.subr.bf16.mxu0 %v1304_v53 }
 0x248   :  { %v426_v41 = vpop.permute.xlu0 %425  ;;  %v1326_v27 = vpack.c.bf16 %v423_v54, %v407_v14 }
 0x249   :  { %v1306_v43 = vpack.c.bf16 %v421_v17, %v405_v4  ;;  %v428_v45 = vpop.permute.xlu1 %427  ;;  %v1324_v51 = vpack.c.bf16 %v424_v10, %v408_v7 }
 0x24a   :  { %v435_v46 = vsel %vm111_vm2, %v426_v41, %v428_v45 }
 0x24b   :  { %1307 = vmatpush1.bf16.msra.mxu0 %v1306_v43  ;;  %1325 = vmatprep.subr.bf16.mxu1 %v1324_v51  ;;  %v438_v3 = vmul.f32 %v435_v46, %v1768_v47 }
 0x24c   :  { %v430_v50 = vpop.permute.xlu0 %429  ;;  %1327 = vmatpush1.bf16.msra.mxu1 %v1326_v27 }
 0x24d   :  { %v432_v29 = vpop.permute.xlu1 %431  ;;  %v434_v42 = vsel %vm111_vm2, %v428_v45, %v430_v50 }
 0x24e   :  { %v433_v54 = vsel %vm111_vm2, %v430_v50, %v432_v29  ;;  %v436_v19 = vsel %vm111_vm2, %v432_v29, %v426_v41  ;;  %v439_v50 = vmul.f32 %v434_v42, %v1781_v56 }
 0x24f   :  { %v437_v46 = vmul.f32 %v436_v19, %v1774_v52  ;;  %v440_v41 = vmul.f32 %v433_v54, %v1783_v57  ;;  %v457_v54 = vmul.f32 %v1924_v1, %v1809_v31  ;;  %v459_v1 = vmul.f32 %v1928_v55, %v1815_v34 }
 0x250   :  { %v442_v48 = vpop.permute.xlu0 %441 }
 0x251   :  { %v444_v2 = vpop.permute.xlu1 %443 }
 0x252   :  { %v451_v53 = vsel %vm132_vm3, %v442_v48, %v444_v2 }
 0x253   :  { %v454_v4 = vmul.f32 %v451_v53, %v1772_v49 }
 0x254   :  { %v446_v27 = vpop.permute.xlu0 %445 }
 0x255   :  { %v450_v7 = vsel %vm132_vm3, %v444_v2, %v446_v27  ;;  %v448_v17 = vpop.permute.xlu1 %447  ;;  %v1308_v10 = vpack.c.bf16 %v454_v4, %v438_v3 }
 0x256   :  { %v455_v14 = vmul.f32 %v450_v7, %v1792_v62  ;;  %v449_v43 = vsel %vm132_vm3, %v446_v27, %v448_v17  ;;  %v452_v51 = vsel %vm132_vm3, %v448_v17, %v442_v48 }
 0x257   :  { %v453_v29 = vmul.f32 %v452_v51, %v1790_v61  ;;  %v456_v45 = vmul.f32 %v449_v43, %v1794_v63  ;;  %1309 = vmatprep.subr.bf16.mxu0 %v1308_v10  ;;  %v458_v51 = vmul.f32 %v1926_v0, %v1811_v32 }
 0x258   :  { %v462_v2 = vpop.permute.xlu0 %461  ;;  %v1330_v7 = vpack.c.bf16 %v455_v14, %v439_v50 }
 0x259   :  { %v1310_v53 = vpack.c.bf16 %v453_v29, %v437_v46  ;;  %v464_v3 = vpop.permute.xlu1 %463  ;;  %v1328_v4 = vpack.c.bf16 %v456_v45, %v440_v41  ;;  %v460_v29 = vmul.f32 %v1932_v59, %v1813_v33 }
 0x25a   :  { %v471_v27 = vsel %vm161_vm4, %v462_v2, %v464_v3 }
 0x25b   :  { %1311 = vmatpush1.bf16.msra.mxu0 %v1310_v53  ;;  %1329 = vmatprep.subr.bf16.mxu1 %v1328_v4  ;;  %v473_v19 = vmul.f32 %v471_v27, %v1817_v35 }
 0x25c   :  { %v466_v48 = vpop.permute.xlu0 %465  ;;  %1331 = vmatpush1.bf16.msra.mxu1 %v1330_v7 }
 0x25d   :  { %v470_v42 = vsel %vm161_vm4, %v464_v3, %v466_v48  ;;  %v468_v17 = vpop.permute.xlu1 %467  ;;  %v1314_v53 = vpack.c.bf16 %v473_v19, %v457_v54 }
 0x25e   :  { %v474_v10 = vmul.f32 %v470_v42, %v1823_v38  ;;  %v469_v14 = vsel %vm161_vm4, %v466_v48, %v468_v17  ;;  %v472_v43 = vsel %vm161_vm4, %v468_v17, %v462_v2 }
 0x25f   :  { %v475_v46 = vmul.f32 %v469_v14, %v1825_v39  ;;  %v476_v41 = vmul.f32 %v472_v43, %v1821_v37 }
 0x260   :  { %v478_v45 = vpop.permute.xlu0 %477  ;;  %v1312_v50 = vpack.c.bf16 %v474_v10, %v458_v51 }
 0x261   :  { %v1334_v3 = vpack.c.bf16 %v475_v46, %v459_v1  ;;  %v480_v4 = vpop.permute.xlu1 %479  ;;  %v1332_v7 = vpack.c.bf16 %v476_v41, %v460_v29 }
 0x262   :  { %1313 = vmatprep.subr.bf16.mxu0 %v1312_v50  ;;  %v487_v48 = vsel %vm182_vm6, %v478_v45, %v480_v4 }
 0x263   :  { %1315 = vmatpush1.bf16.msra.mxu0 %v1314_v53  ;;  %1333 = vmatprep.subr.bf16.mxu1 %v1332_v7  ;;  %v489_v10 = vmul.f32 %v487_v48, %v1869_v28 }
 0x264   :  { %v482_v0 = vpop.permute.xlu0 %481  ;;  %1335 = vmatpush1.bf16.msra.mxu1 %v1334_v3 }
 0x265   :  { %v484_v2 = vpop.permute.xlu1 %483  ;;  %v486_v54 = vsel %vm182_vm6, %v480_v4, %v482_v0 }
 0x266   :  { %v485_v19 = vsel %vm182_vm6, %v482_v0, %v484_v2  ;;  %v488_v42 = vsel %vm182_vm6, %v484_v2, %v478_v45  ;;  %v490_v1 = vmul.f32 %v486_v54, %v1851_v11 }
 0x267   :  { %v491_v45 = vmul.f32 %v485_v19, %v1855_v15  ;;  %v492_v50 = vmul.f32 %v488_v42, %v1847_v9 }
 0x268   :  { %v494_v55 = vpop.permute.xlu0 %493 }
 0x269   :  { %v496_v27 = vpop.permute.xlu1 %495 }
 0x26a   :  { %v503_v59 = vsel %vm203_vm5, %v494_v55, %v496_v27 }
 0x26b   :  { %v505_v14 = vmul.f32 %v503_v59, %v1857_v16 }
 0x26c   :  { %v498_v17 = vpop.permute.xlu0 %497 }
 0x26d   :  { %v502_v43 = vsel %vm203_vm5, %v496_v27, %v498_v17  ;;  %v500_v51 = vpop.permute.xlu1 %499  ;;  %v1318_v0 = vpack.c.bf16 %v505_v14, %v489_v10 }
 0x26e   :  { %v506_v46 = vmul.f32 %v502_v43, %v1865_v22  ;;  %v501_v41 = vsel %vm203_vm5, %v498_v17, %v500_v51  ;;  %v504_v29 = vsel %vm203_vm5, %v500_v51, %v494_v55 }
 0x26f   :  { %v507_v53 = vmul.f32 %v501_v41, %v1867_v24  ;;  %v508_v3 = vmul.f32 %v504_v29, %v1863_v20 }
 0x270   :  { %v510_v4 = vpop.permute.xlu0 %509  ;;  %v1316_v7 = vpack.c.bf16 %v506_v46, %v490_v1 }
 0x271   :  { %v1338_v2 = vpack.c.bf16 %v507_v53, %v491_v45  ;;  %v512_v27 = vpop.permute.xlu1 %511  ;;  %v1336_v48 = vpack.c.bf16 %v508_v3, %v492_v50  ;;  %v392_v45 = vld [vmem:[#allocation7 + $0x8] sm:$0xff]  ;;  %v2454_v50 = vmov 0.0  }
 0x272   :  { %v519_v59 = vsel %vm224_vm7, %v510_v4, %v512_v27  ;;  %1317 = vmatprep.subr.bf16.mxu0 %v1316_v7 }
 0x273   :  { %1319 = vmatpush1.bf16.msra.mxu0 %v1318_v0  ;;  %1337 = vmatprep.subr.bf16.mxu1 %v1336_v48  ;;  %v521_v54 = vmul.f32 %v519_v59, %v1888_v58 }
 0x274   :  { %v514_v55 = vpop.permute.xlu0 %513  ;;  %1339 = vmatpush1.bf16.msra.mxu1 %v1338_v2 }
 0x275   :  { %v518_v19 = vsel %vm224_vm7, %v512_v27, %v514_v55  ;;  %v516_v42 = vpop.permute.xlu1 %515  ;;  %v1322_v46 = vpack.c.bf16 %v1914_v44, %v521_v54 }
 0x276   :  { %v522_v17 = vmul.f32 %v518_v19, %v1894_v5  ;;  %v517_v10 = vsel %vm224_vm7, %v514_v55, %v516_v42  ;;  %v520_v14 = vsel %vm224_vm7, %v516_v42, %v510_v4 }
 0x277   :  { %v523_v43 = vmul.f32 %v517_v10, %v1896_v6  ;;  %v524_v51 = vmul.f32 %v520_v14, %v1892_v60 }
 0x278   :  { %v1320_v1 = vpack.c.bf16 %v1905_v30, %v522_v17 }
 0x279   :  { %v1342_v41 = vpack.c.bf16 %v1909_v40, %v523_v43  ;;  %v1340_v29 = vpack.c.bf16 %v1907_v36, %v524_v51 }
 0x27a   :  { %1321 = vmatprep.subr.bf16.mxu0 %v1320_v1 }
 0x27b   :  { %1323 = vmatpush1.bf16.msra.mxu0 %v1322_v46  ;;  %1341 = vmatprep.subr.bf16.mxu1 %v1340_v29 }
 0x27c   :  { %1343 = vmatpush1.bf16.msra.mxu1 %v1342_v41 }
 0x27e   :  { %1258 = vmatmul.mubr.msk.f32.vlgmr.msra.gmra.mrb[2].mxu0 %vm241_vm8, %v392_v45 }
 0x27f   :  { %1259 = vmatmul.mubr.msk.f32.vlgmr.msra.gmra.mrb[2].mxu1 %vm241_vm8, %v392_v45  ;;  %875 = vmatprep.mubr.f32.mxu0 %v2454_v50 }
 0x280   :  { %946 = vmatprep.mubr.f32.mxu1 %v2454_v50 }
 0x351   :  { %v594_v53 = vpop.f32.mrb[2].mxu0 }
 0x352   :  { %v2108_v3 = vmax.f32 %v594_v53, 0.0  ;;  %v596_v4 = vpop.f32.mrb[3].mxu0  ;;  %v665_v7 = vpop.f32.mrb[2].mxu1 }
 0x353   :  { %v2110_v0 = vmax.f32 %v596_v4, 0.0  ;;  %v667_v2 = vpop.f32.mrb[3].mxu1  ;;  %v2112_v27 = vmax.f32 %v665_v7, 0.0  ;;  %v2455_v7 = vld [vmem:[#allocation12_spill] sm:$0xff] }
 0x354   :  { %676 = vrot.lane.b32.xlu0 %v2108_v3, %s1582_s23  ;;  %v2116_v48 = vmax.f32 %v667_v2, 0.0 }
 0x355   :  { %678 = vrot.lane.b32.xlu1 %v2110_v0, %s1582_s23 }
 0x358   :  { %680 = vrot.lane.b32.xlu0 %v2112_v27, %s1582_s23 }
 0x359   :  { %682 = vrot.lane.b32.xlu1 %v2116_v48, %s1582_s23 }
 0x35c   :  { %692 = vrot.lane.b32.xlu0 %v2108_v3, %s1583_s2 }
 0x35d   :  { %694 = vrot.lane.b32.xlu1 %v2110_v0, %s1583_s2 }
 0x360   :  { %696 = vrot.lane.b32.xlu0 %v2112_v27, %s1583_s2 }
 0x361   :  { %698 = vrot.lane.b32.xlu1 %v2116_v48, %s1583_s2 }
 0x364   :  { %708 = vrot.lane.b32.xlu0 %v2108_v3, %s1584_s24 }
 0x365   :  { %710 = vrot.lane.b32.xlu1 %v2110_v0, %s1584_s24 }
 0x368   :  { %712 = vrot.lane.b32.xlu0 %v2112_v27, %s1584_s24 }
 0x369   :  { %714 = vrot.lane.b32.xlu1 %v2116_v48, %s1584_s24 }
 0x36c   :  { %724 = vrot.lane.b32.xlu0 %v2108_v3, %s1585_s25 }
 0x36d   :  { %726 = vrot.lane.b32.xlu1 %v2110_v0, %s1585_s25 }
 0x370   :  { %728 = vrot.lane.b32.xlu0 %v2112_v27, %s1585_s25 }
 0x371   :  { %730 = vrot.lane.b32.xlu1 %v2116_v48, %s1585_s25 }
 0x374   :  { %744 = vrot.lane.b32.xlu0 %v2108_v3, %s1586_s26 }
 0x375   :  { %746 = vrot.lane.b32.xlu1 %v2110_v0, %s1586_s26 }
 0x378   :  { %748 = vrot.lane.b32.xlu0 %v2112_v27, %s1586_s26 }
 0x379   :  { %750 = vrot.lane.b32.xlu1 %v2116_v48, %s1586_s26 }
 0x37c   :  { %760 = vrot.lane.b32.xlu0 %v2108_v3, %s1587_s27 }
 0x37d   :  { %762 = vrot.lane.b32.xlu1 %v2110_v0, %s1587_s27 }
 0x380   :  { %764 = vrot.lane.b32.xlu0 %v2112_v27, %s1587_s27 }
 0x381   :  { %766 = vrot.lane.b32.xlu1 %v2116_v48, %s1587_s27 }
 0x384   :  { %776 = vrot.lane.b32.xlu0 %v2108_v3, %s1588_s28 }
 0x385   :  { %778 = vrot.lane.b32.xlu1 %v2110_v0, %s1588_s28 }
 0x388   :  { %780 = vrot.lane.b32.xlu0 %v2112_v27, %s1588_s28 }
 0x389   :  { %782 = vrot.lane.b32.xlu1 %v2116_v48, %s1588_s28 }
 0x38c   :  { %792 = vrot.lane.b32.xlu0 %v2108_v3, %s1590_s29 }
 0x38d   :  { %794 = vrot.lane.b32.xlu1 %v2110_v0, %s1590_s29 }
 0x390   :  { %796 = vrot.lane.b32.xlu0 %v2112_v27, %s1590_s29 }
 0x391   :  { %798 = vrot.lane.b32.xlu1 %v2116_v48, %s1590_s29 }
 0x3c6   :  { %v677_v59 = vpop.permute.xlu0 %676 }
 0x3c7   :  { %v679_v55 = vpop.permute.xlu1 %678 }
 0x3c8   :  { %v686_v42 = vsel %vm69_vm0, %v677_v59, %v679_v55 }
 0x3c9   :  { %v689_v43 = vmul.f32 %v686_v42, %v1728_v12 }
 0x3ca   :  { %v681_v54 = vpop.permute.xlu0 %680 }
 0x3cb   :  { %v683_v19 = vpop.permute.xlu1 %682  ;;  %v685_v29 = vsel %vm69_vm0, %v679_v55, %v681_v54 }
 0x3cc   :  { %v684_v1 = vsel %vm69_vm0, %v681_v54, %v683_v19  ;;  %v687_v46 = vsel %vm69_vm0, %v683_v19, %v677_v59  ;;  %v690_v54 = vmul.f32 %v685_v29, %v1750_v26 }
 0x3cd   :  { %v688_v42 = vmul.f32 %v687_v46, %v1736_v18  ;;  %v691_v59 = vmul.f32 %v684_v1, %v1744_v23 }
 0x3ce   :  { %v693_v17 = vpop.permute.xlu0 %692 }
 0x3cf   :  { %v695_v10 = vpop.permute.xlu1 %694 }
 0x3d0   :  { %v702_v14 = vsel %vm90_vm1, %v693_v17, %v695_v10 }
 0x3d1   :  { %v705_v51 = vmul.f32 %v702_v14, %v1730_v13 }
 0x3d2   :  { %v697_v41 = vpop.permute.xlu0 %696 }
 0x3d3   :  { %v701_v45 = vsel %vm90_vm1, %v695_v10, %v697_v41  ;;  %v699_v53 = vpop.permute.xlu1 %698  ;;  %v1344_v4 = vpack.c.bf16 %v705_v51, %v689_v43 }
 0x3d4   :  { %v706_v2 = vmul.f32 %v701_v45, %v2455_v7  ;;  %v700_v12 = vsel %vm90_vm1, %v697_v41, %v699_v53  ;;  %v703_v13 = vsel %vm90_vm1, %v699_v53, %v693_v17 }
 0x3d5   :  { %v704_v19 = vmul.f32 %v703_v13, %v1740_v21  ;;  %v707_v55 = vmul.f32 %v700_v12, %v1748_v25  ;;  %1345 = vmatprep.subr.bf16.mxu0 %v1344_v4 }
 0x3d6   :  { %v709_v10 = vpop.permute.xlu0 %708  ;;  %v1366_v45 = vpack.c.bf16 %v706_v2, %v690_v54 }
 0x3d7   :  { %v1346_v14 = vpack.c.bf16 %v704_v19, %v688_v42  ;;  %v711_v43 = vpop.permute.xlu1 %710  ;;  %v1364_v51 = vpack.c.bf16 %v707_v55, %v691_v59 }
 0x3d8   :  { %v718_v18 = vsel %vm111_vm2, %v709_v10, %v711_v43 }
 0x3d9   :  { %1347 = vmatpush1.bf16.msra.mxu0 %v1346_v14  ;;  %1365 = vmatprep.subr.bf16.mxu1 %v1364_v51  ;;  %v721_v26 = vmul.f32 %v718_v18, %v1768_v47 }
 0x3da   :  { %v713_v41 = vpop.permute.xlu0 %712  ;;  %1367 = vmatpush1.bf16.msra.mxu1 %v1366_v45 }
 0x3db   :  { %v715_v17 = vpop.permute.xlu1 %714  ;;  %v717_v4 = vsel %vm111_vm2, %v711_v43, %v713_v41 }
 0x3dc   :  { %v716_v46 = vsel %vm111_vm2, %v713_v41, %v715_v17  ;;  %v719_v29 = vsel %vm111_vm2, %v715_v17, %v709_v10  ;;  %v722_v54 = vmul.f32 %v717_v4, %v1781_v56 }
 0x3dd   :  { %v720_v42 = vmul.f32 %v719_v29, %v1774_v52  ;;  %v723_v59 = vmul.f32 %v716_v46, %v1783_v57  ;;  %v740_v57 = vmul.f32 %v2108_v3, %v1809_v31  ;;  %v742_v31 = vmul.f32 %v2112_v27, %v1815_v34 }
 0x3de   :  { %v725_v23 = vpop.permute.xlu0 %724 }
 0x3df   :  { %v727_v21 = vpop.permute.xlu1 %726 }
 0x3e0   :  { %v734_v25 = vsel %vm132_vm3, %v725_v23, %v727_v21 }
 0x3e1   :  { %v737_v1 = vmul.f32 %v734_v25, %v1772_v49 }
 0x3e2   :  { %v729_v53 = vpop.permute.xlu0 %728 }
 0x3e3   :  { %v733_v7 = vsel %vm132_vm3, %v727_v21, %v729_v53  ;;  %v731_v2 = vpop.permute.xlu1 %730  ;;  %v1348_v12 = vpack.c.bf16 %v737_v1, %v721_v26  ;;  %v743_v21 = vmul.f32 %v2116_v48, %v1813_v33 }
 0x3e4   :  { %v738_v13 = vmul.f32 %v733_v7, %v1792_v62  ;;  %v732_v47 = vsel %vm132_vm3, %v729_v53, %v731_v2  ;;  %v735_v49 = vsel %vm132_vm3, %v731_v2, %v725_v23  ;;  %v741_v23 = vmul.f32 %v2110_v0, %v1811_v32 }
 0x3e5   :  { %v736_v19 = vmul.f32 %v735_v49, %v1790_v61  ;;  %v739_v55 = vmul.f32 %v732_v47, %v1794_v63  ;;  %1349 = vmatprep.subr.bf16.mxu0 %v1348_v12 }
 0x3e6   :  { %v745_v10 = vpop.permute.xlu0 %744  ;;  %v1370_v51 = vpack.c.bf16 %v738_v13, %v722_v54 }
 0x3e7   :  { %v1350_v14 = vpack.c.bf16 %v736_v19, %v720_v42  ;;  %v747_v62 = vpop.permute.xlu1 %746  ;;  %v1368_v43 = vpack.c.bf16 %v739_v55, %v723_v59 }
 0x3e8   :  { %v754_v45 = vsel %vm161_vm4, %v745_v10, %v747_v62 }
 0x3e9   :  { %1351 = vmatpush1.bf16.msra.mxu0 %v1350_v14  ;;  %1369 = vmatprep.subr.bf16.mxu1 %v1368_v43  ;;  %v756_v61 = vmul.f32 %v754_v45, %v1817_v35 }
 0x3ea   :  { %v749_v52 = vpop.permute.xlu0 %748  ;;  %1371 = vmatpush1.bf16.msra.mxu1 %v1370_v51 }
 0x3eb   :  { %v753_v56 = vsel %vm161_vm4, %v747_v62, %v749_v52  ;;  %v751_v63 = vpop.permute.xlu1 %750  ;;  %v1354_v26 = vpack.c.bf16 %v756_v61, %v740_v57 }
 0x3ec   :  { %v757_v41 = vmul.f32 %v753_v56, %v1823_v38  ;;  %v752_v17 = vsel %vm161_vm4, %v749_v52, %v751_v63  ;;  %v755_v18 = vsel %vm161_vm4, %v751_v63, %v745_v10 }
 0x3ed   :  { %v758_v35 = vmul.f32 %v752_v17, %v1825_v39  ;;  %v759_v3 = vmul.f32 %v755_v18, %v1821_v37 }
 0x3ee   :  { %v761_v38 = vpop.permute.xlu0 %760  ;;  %v1352_v25 = vpack.c.bf16 %v757_v41, %v741_v23 }
 0x3ef   :  { %v1374_v1 = vpack.c.bf16 %v758_v35, %v742_v31  ;;  %v763_v46 = vpop.permute.xlu1 %762  ;;  %v1372_v29 = vpack.c.bf16 %v759_v3, %v743_v21 }
 0x3f0   :  { %1353 = vmatprep.subr.bf16.mxu0 %v1352_v25  ;;  %v770_v37 = vsel %vm182_vm6, %v761_v38, %v763_v46 }
 0x3f1   :  { %1355 = vmatpush1.bf16.msra.mxu0 %v1354_v26  ;;  %1373 = vmatprep.subr.bf16.mxu1 %v1372_v29  ;;  %v772_v7 = vmul.f32 %v770_v37, %v1869_v28  ;;  %v1441_v26 = vld [vmem:[#allocation5 + $0x8] sm:$0xff] }
 0x3f2   :  { %v765_v32 = vpop.permute.xlu0 %764  ;;  %1375 = vmatpush1.bf16.msra.mxu1 %v1374_v1 }
 0x3f3   :  { %v767_v0 = vpop.permute.xlu1 %766  ;;  %v769_v39 = vsel %vm182_vm6, %v763_v46, %v765_v32  ;;  %v1442_v46 = vld [vmem:[#allocation5 + $0x28] sm:$0xff] }
 0x3f4   :  { %v768_v48 = vsel %vm182_vm6, %v765_v32, %v767_v0  ;;  %v771_v53 = vsel %vm182_vm6, %v767_v0, %v761_v38  ;;  %v773_v47 = vmul.f32 %v769_v39, %v1851_v11 }
 0x3f5   :  { %v774_v19 = vmul.f32 %v768_v48, %v1855_v15  ;;  %v775_v28 = vmul.f32 %v771_v53, %v1847_v9  ;;  %v1443_v48 = vld [vmem:[#allocation5 + $0x30] sm:$0xff] }
 0x3f6   :  { %v777_v34 = vpop.permute.xlu0 %776 }
 0x3f7   :  { %v779_v27 = vpop.permute.xlu1 %778 }
 0x3f8   :  { %v786_v33 = vsel %vm203_vm5, %v777_v34, %v779_v27 }
 0x3f9   :  { %v788_v2 = vmul.f32 %v786_v33, %v1857_v16 }
 0x3fa   :  { %v781_v4 = vpop.permute.xlu0 %780 }
 0x3fb   :  { %v785_v12 = vsel %vm203_vm5, %v779_v27, %v781_v4  ;;  %v783_v13 = vpop.permute.xlu1 %782  ;;  %v1358_v14 = vpack.c.bf16 %v788_v2, %v772_v7  ;;  %v1444_v2 = vld [vmem:[#allocation5] sm:$0xff] }
 0x3fc   :  { %v789_v49 = vmul.f32 %v785_v12, %v1865_v22  ;;  %v784_v42 = vsel %vm203_vm5, %v781_v4, %v783_v13  ;;  %v787_v59 = vsel %vm203_vm5, %v783_v13, %v777_v34  ;;  %v1445_v13 = vld [vmem:[#allocation5 + $0x18] sm:$0xff] }
 0x3fd   :  { %v790_v16 = vmul.f32 %v784_v42, %v1867_v24  ;;  %v791_v55 = vmul.f32 %v787_v59, %v1863_v20  ;;  %v1447_v59 = vld [vmem:[#allocation5 + $0x38] sm:$0xff] }
 0x3fe   :  { %v793_v54 = vpop.permute.xlu0 %792  ;;  %v1356_v10 = vpack.c.bf16 %v789_v49, %v773_v47  ;;  %v1446_v49 = vld [vmem:[#allocation5 + $0x20] sm:$0xff] }
 0x3ff   :  { %v1378_v11 = vpack.c.bf16 %v790_v16, %v774_v19  ;;  %v795_v62 = vpop.permute.xlu1 %794  ;;  %v1376_v22 = vpack.c.bf16 %v791_v55, %v775_v28  ;;  %v1448_v28 = vld [vmem:[#allocation5 + $0x10] sm:$0xff] }
 0x400   :  { %v802_v43 = vsel %vm224_vm7, %v793_v54, %v795_v62  ;;  %1357 = vmatprep.subr.bf16.mxu0 %v1356_v10 }
 0x401   :  { %1359 = vmatpush1.bf16.msra.mxu0 %v1358_v14  ;;  %1377 = vmatprep.subr.bf16.mxu1 %v1376_v22  ;;  %v804_v9 = vmul.f32 %v802_v43, %v1888_v58 }
 0x402   :  { %v797_v51 = vpop.permute.xlu0 %796  ;;  %1379 = vmatpush1.bf16.msra.mxu1 %v1378_v11 }
 0x403   :  { %v801_v15 = vsel %vm224_vm7, %v795_v62, %v797_v51  ;;  %v799_v20 = vpop.permute.xlu1 %798  ;;  %v1362_v58 = vpack.c.bf16 %v1914_v44, %v804_v9 }
 0x404   :  { %v805_v24 = vmul.f32 %v801_v15, %v1894_v5  ;;  %v800_v45 = vsel %vm224_vm7, %v797_v51, %v799_v20  ;;  %v803_v52 = vsel %vm224_vm7, %v799_v20, %v793_v54  ;;  %v675_v5 = vld [vmem:[#allocation7 + $0x10] sm:$0xff]  ;;  %v1449_v20 = vld [vmem:[#allocation5 + $0x48] sm:$0xff] }
 0x405   :  { %v806_v57 = vmul.f32 %v800_v45, %v1896_v6  ;;  %v807_v61 = vmul.f32 %v803_v52, %v1892_v60  ;;  %v1450_v45 = vld [vmem:[#allocation5 + $0x68] sm:$0xff] }
 0x406   :  { %v1360_v56 = vpack.c.bf16 %v1905_v30, %v805_v24 }
 0x407   :  { %v1382_v63 = vpack.c.bf16 %v1909_v40, %v806_v57  ;;  %v1380_v41 = vpack.c.bf16 %v1907_v36, %v807_v61 }
 0x408   :  { %1361 = vmatprep.subr.bf16.mxu0 %v1360_v56 }
 0x409   :  { %1363 = vmatpush1.bf16.msra.mxu0 %v1362_v58  ;;  %1381 = vmatprep.subr.bf16.mxu1 %v1380_v41 }
 0x40a   :  { %1383 = vmatpush1.bf16.msra.mxu1 %v1382_v63 }
 0x40c   :  { %1260 = vmatmul.mubr.msk.f32.vlgmr.msra.gmra.mrb[4].mxu0 %vm241_vm8, %v675_v5 }
 0x40d   :  { %1261 = vmatmul.mubr.msk.f32.vlgmr.msra.gmra.mrb[4].mxu1 %vm241_vm8, %v675_v5  ;;  %1158 = vmatprep.mubr.f32.mxu0 %v2454_v50 }
 0x40e   :  { %1229 = vmatprep.mubr.f32.mxu1 %v2454_v50 }
 0x4df   :  { %v877_v60 = vpop.f32.mrb[4].mxu0 }
 0x4e0   :  { %v2292_v6 = vmax.f32 %v877_v60, 0.0  ;;  %v879_v30 = vpop.f32.mrb[5].mxu0  ;;  %v948_v40 = vpop.f32.mrb[4].mxu1  ;;  %v1451_v60 = vld [vmem:[#allocation5 + $0x70] sm:$0xff] }
 0x4e1   :  { %v2294_v44 = vmax.f32 %v879_v30, 0.0  ;;  %v950_v36 = vpop.f32.mrb[5].mxu1  ;;  %v2296_v17 = vmax.f32 %v948_v40, 0.0 }
 0x4e2   :  { %959 = vrot.lane.b32.xlu0 %v2292_v6, %s1582_s23  ;;  %v2300_v18 = vmax.f32 %v950_v36, 0.0 }
 0x4e3   :  { %961 = vrot.lane.b32.xlu1 %v2294_v44, %s1582_s23 }
 0x4e6   :  { %963 = vrot.lane.b32.xlu0 %v2296_v17, %s1582_s23 }
 0x4e7   :  { %965 = vrot.lane.b32.xlu1 %v2300_v18, %s1582_s23 }
 0x4ea   :  { %975 = vrot.lane.b32.xlu0 %v2292_v6, %s1583_s2 }
 0x4eb   :  { %977 = vrot.lane.b32.xlu1 %v2294_v44, %s1583_s2 }
 0x4ee   :  { %979 = vrot.lane.b32.xlu0 %v2296_v17, %s1583_s2 }
 0x4ef   :  { %981 = vrot.lane.b32.xlu1 %v2300_v18, %s1583_s2 }
 0x4f2   :  { %991 = vrot.lane.b32.xlu0 %v2292_v6, %s1584_s24 }
 0x4f3   :  { %993 = vrot.lane.b32.xlu1 %v2294_v44, %s1584_s24 }
 0x4f6   :  { %995 = vrot.lane.b32.xlu0 %v2296_v17, %s1584_s24 }
 0x4f7   :  { %997 = vrot.lane.b32.xlu1 %v2300_v18, %s1584_s24 }
 0x4fa   :  { %1007 = vrot.lane.b32.xlu0 %v2292_v6, %s1585_s25 }
 0x4fb   :  { %1009 = vrot.lane.b32.xlu1 %v2294_v44, %s1585_s25 }
 0x4fe   :  { %1011 = vrot.lane.b32.xlu0 %v2296_v17, %s1585_s25 }
 0x4ff   :  { %1013 = vrot.lane.b32.xlu1 %v2300_v18, %s1585_s25 }
 0x502   :  { %1027 = vrot.lane.b32.xlu0 %v2292_v6, %s1586_s26 }
 0x503   :  { %1029 = vrot.lane.b32.xlu1 %v2294_v44, %s1586_s26 }
 0x506   :  { %1031 = vrot.lane.b32.xlu0 %v2296_v17, %s1586_s26 }
 0x507   :  { %1033 = vrot.lane.b32.xlu1 %v2300_v18, %s1586_s26 }
 0x50a   :  { %1043 = vrot.lane.b32.xlu0 %v2292_v6, %s1587_s27 }
 0x50b   :  { %1045 = vrot.lane.b32.xlu1 %v2294_v44, %s1587_s27 }
 0x50e   :  { %1047 = vrot.lane.b32.xlu0 %v2296_v17, %s1587_s27 }
 0x50f   :  { %1049 = vrot.lane.b32.xlu1 %v2300_v18, %s1587_s27 }
 0x512   :  { %1059 = vrot.lane.b32.xlu0 %v2292_v6, %s1588_s28 }
 0x513   :  { %1061 = vrot.lane.b32.xlu1 %v2294_v44, %s1588_s28 }
 0x516   :  { %1063 = vrot.lane.b32.xlu0 %v2296_v17, %s1588_s28 }
 0x517   :  { %1065 = vrot.lane.b32.xlu1 %v2300_v18, %s1588_s28 }
 0x51a   :  { %1075 = vrot.lane.b32.xlu0 %v2292_v6, %s1590_s29 }
 0x51b   :  { %1077 = vrot.lane.b32.xlu1 %v2294_v44, %s1590_s29 }
 0x51e   :  { %1079 = vrot.lane.b32.xlu0 %v2296_v17, %s1590_s29 }
 0x51f   :  { %1081 = vrot.lane.b32.xlu1 %v2300_v18, %s1590_s29 }
 0x554   :  { %v960_v50 = vpop.permute.xlu0 %959 }
 0x555   :  { %v962_v23 = vpop.permute.xlu1 %961 }
 0x556   :  { %v969_v3 = vsel %vm69_vm0, %v960_v50, %v962_v23 }
 0x557   :  { %v972_v1 = vmul.f32 %v1441_v26, %v969_v3  ;;  %v1454_v3 = vld [vmem:[#allocation5 + $0x60] sm:$0xff]  ;;  %v1456_v26 = vld [vmem:[#allocation5 + $0x50] sm:$0xff] }
 0x558   :  { %v964_v31 = vpop.permute.xlu0 %963 }
 0x559   :  { %v966_v35 = vpop.permute.xlu1 %965  ;;  %v968_v27 = vsel %vm69_vm0, %v962_v23, %v964_v31 }
 0x55a   :  { %v967_v32 = vsel %vm69_vm0, %v964_v31, %v966_v35  ;;  %v970_v0 = vsel %vm69_vm0, %v966_v35, %v960_v50  ;;  %v973_v16 = vmul.f32 %v1448_v28, %v968_v27  ;;  %v1452_v50 = vld [vmem:[#allocation5 + $0x40] sm:$0xff]  ;;  %v1453_v31 = vld [vmem:[#allocation5 + $0x58] sm:$0xff] }
 0x55b   :  { %v971_v12 = vmul.f32 %v1444_v2, %v970_v0  ;;  %v974_v47 = vmul.f32 %v1445_v13, %v967_v32  ;;  %v1459_v2 = vld [vmem:[#allocation5 + $0xa8] sm:$0xff] }
 0x55c   :  { %v976_v21 = vpop.permute.xlu0 %975 }
 0x55d   :  { %v978_v38 = vpop.permute.xlu1 %977 }
 0x55e   :  { %v985_v25 = vsel %vm90_vm1, %v976_v21, %v978_v38 }
 0x55f   :  { %v988_v29 = vmul.f32 %v1442_v46, %v985_v25 }
 0x560   :  { %v980_v34 = vpop.permute.xlu0 %979 }
 0x561   :  { %v984_v37 = vsel %vm90_vm1, %v978_v38, %v980_v34  ;;  %v982_v33 = vpop.permute.xlu1 %981  ;;  %v1384_v39 = vpack.c.bf16 %v988_v29, %v972_v1  ;;  %v1455_v38 = vld [vmem:[#allocation5 + $0x78] sm:$0xff] }
 0x562   :  { %v989_v53 = vmul.f32 %v1443_v48, %v984_v37  ;;  %v983_v4 = vsel %vm90_vm1, %v980_v34, %v982_v33  ;;  %v986_v7 = vsel %vm90_vm1, %v982_v33, %v976_v21  ;;  %v1457_v33 = vld [vmem:[#allocation5 + $0x80] sm:$0xff] }
 0x563   :  { %v987_v42 = vmul.f32 %v1446_v49, %v986_v7  ;;  %v990_v19 = vmul.f32 %v1447_v59, %v983_v4  ;;  %1385 = vmatprep.subr.bf16.mxu0 %v1384_v39  ;;  %v1023_v39 = vmul.f32 %v1457_v33, %v2292_v6  ;;  %v1458_v48 = vld [vmem:[#allocation5 + $0xa0] sm:$0xff]  ;;  %v1460_v49 = vld [vmem:[#allocation5 + $0x88] sm:$0xff]  ;;  %v1461_v59 = vld [vmem:[#allocation5 + $0x90] sm:$0xff] }
 0x564   :  { %v992_v55 = vpop.permute.xlu0 %991  ;;  %v1406_v11 = vpack.c.bf16 %v989_v53, %v973_v16  ;;  %v1025_v6 = vmul.f32 %v1461_v59, %v2296_v17  ;;  %v1463_v16 = vld [vmem:[#allocation5 + $0xb8] sm:$0xff] }
 0x565   :  { %v1386_v54 = vpack.c.bf16 %v987_v42, %v971_v12  ;;  %v994_v10 = vpop.permute.xlu1 %993  ;;  %v1404_v14 = vpack.c.bf16 %v990_v19, %v974_v47  ;;  %v1024_v42 = vmul.f32 %v1460_v49, %v2294_v44  ;;  %v1462_v19 = vld [vmem:[#allocation5 + $0xb0] sm:$0xff] }
 0x566   :  { %v1001_v43 = vsel %vm111_vm2, %v992_v55, %v994_v10 }
 0x567   :  { %1387 = vmatpush1.bf16.msra.mxu0 %v1386_v54  ;;  %1405 = vmatprep.subr.bf16.mxu1 %v1404_v14  ;;  %v1004_v24 = vmul.f32 %v1449_v20, %v1001_v43  ;;  %v1464_v54 = vld [vmem:[#allocation5 + $0x98] sm:$0xff] }
 0x568   :  { %v996_v62 = vpop.permute.xlu0 %995  ;;  %1407 = vmatpush1.bf16.msra.mxu1 %v1406_v11 }
 0x569   :  { %v998_v22 = vpop.permute.xlu1 %997  ;;  %v1000_v58 = vsel %vm111_vm2, %v994_v10, %v996_v62  ;;  %v1026_v10 = vmul.f32 %v1464_v54, %v2300_v18 }
 0x56a   :  { %v999_v57 = vsel %vm111_vm2, %v996_v62, %v998_v22  ;;  %v1002_v61 = vsel %vm111_vm2, %v998_v22, %v992_v55  ;;  %v1005_v1 = vmul.f32 %v1456_v26, %v1000_v58  ;;  %v1466_v58 = vld [vmem:[#allocation5 + $0xe0] sm:$0xff]  ;;  %v1472_v26 = vld [vmem:[#allocation5 + $0xf8] sm:$0xff] }
 0x56b   :  { %v1003_v23 = vmul.f32 %v1452_v50, %v1002_v61  ;;  %v1006_v35 = vmul.f32 %v1453_v31, %v999_v57  ;;  %v1465_v61 = vld [vmem:[#allocation5 + $0xc0] sm:$0xff]  ;;  %v1469_v31 = vld [vmem:[#allocation5 + $0xd0] sm:$0xff] }
 0x56c   :  { %v1008_v51 = vpop.permute.xlu0 %1007 }
 0x56d   :  { %v1010_v9 = vpop.permute.xlu1 %1009 }
 0x56e   :  { %v1017_v15 = vsel %vm132_vm3, %v1008_v51, %v1010_v9 }
 0x56f   :  { %v1020_v52 = vmul.f32 %v1450_v45, %v1017_v15 }
 0x570   :  { %v1012_v56 = vpop.permute.xlu0 %1011 }
 0x571   :  { %v1016_v63 = vsel %vm132_vm3, %v1010_v9, %v1012_v56  ;;  %v1014_v41 = vpop.permute.xlu1 %1013  ;;  %v1388_v5 = vpack.c.bf16 %v1020_v52, %v1004_v24 }
 0x572   :  { %v1021_v30 = vmul.f32 %v1451_v60, %v1016_v63  ;;  %v1015_v40 = vsel %vm132_vm3, %v1012_v56, %v1014_v41  ;;  %v1018_v36 = vsel %vm132_vm3, %v1014_v41, %v1008_v51  ;;  %v1467_v60 = vld [vmem:[#allocation5 + $0xc8] sm:$0xff] }
 0x573   :  { %v1019_v21 = vmul.f32 %v1454_v3, %v1018_v36  ;;  %v1022_v25 = vmul.f32 %v1455_v38, %v1015_v40  ;;  %1389 = vmatprep.subr.bf16.mxu0 %v1388_v5  ;;  %v1468_v40 = vld [vmem:[#allocation5 + $0xe8] sm:$0xff]  ;;  %v1470_v3 = vld [vmem:[#allocation5 + $0xd8] sm:$0xff]  ;;  %v1471_v38 = vld [vmem:[#allocation5 + $0xf0] sm:$0xff] }
 0x574   :  { %v1028_v46 = vpop.permute.xlu0 %1027  ;;  %v1410_v34 = vpack.c.bf16 %v1021_v30, %v1005_v1 }
 0x575   :  { %v1390_v29 = vpack.c.bf16 %v1019_v21, %v1003_v23  ;;  %v1030_v32 = vpop.permute.xlu1 %1029  ;;  %v1408_v0 = vpack.c.bf16 %v1022_v25, %v1006_v35 }
 0x576   :  { %v1037_v27 = vsel %vm161_vm4, %v1028_v46, %v1030_v32 }
 0x577   :  { %1391 = vmatpush1.bf16.msra.mxu0 %v1390_v29  ;;  %1409 = vmatprep.subr.bf16.mxu1 %v1408_v0  ;;  %v1039_v53 = vmul.f32 %v1458_v48, %v1037_v27 }
 0x578   :  { %v1032_v37 = vpop.permute.xlu0 %1031  ;;  %1411 = vmatpush1.bf16.msra.mxu1 %v1410_v34 }
 0x579   :  { %v1036_v4 = vsel %vm161_vm4, %v1030_v32, %v1032_v37  ;;  %v1034_v7 = vpop.permute.xlu1 %1033  ;;  %v1394_v62 = vpack.c.bf16 %v1039_v53, %v1023_v39  ;;  %v1473_v39 = vld [vmem:[#allocation5 + $0x100] sm:$0xff] }
 0x57a   :  { %v1040_v12 = vmul.f32 %v1459_v2, %v1036_v4  ;;  %v1035_v13 = vsel %vm161_vm4, %v1032_v37, %v1034_v7  ;;  %v1038_v47 = vsel %vm161_vm4, %v1034_v7, %v1028_v46  ;;  %v1474_v7 = vld [vmem:[#allocation5 + $0x108] sm:$0xff] }
 0x57b   :  { %v1041_v28 = vmul.f32 %v1462_v19, %v1035_v13  ;;  %v1042_v55 = vmul.f32 %v1463_v16, %v1038_v47  ;;  %v1475_v47 = vld [vmem:[#allocation5 + $0x110] sm:$0xff] }
 0x57c   :  { %v1044_v14 = vpop.permute.xlu0 %1043  ;;  %v1392_v11 = vpack.c.bf16 %v1040_v12, %v1024_v42  ;;  %v1476_v42 = vld [vmem:[#allocation5 + $0x118] sm:$0xff] }
 0x57d   :  { %v1414_v22 = vpack.c.bf16 %v1041_v28, %v1025_v6  ;;  %v1046_v43 = vpop.permute.xlu1 %1045  ;;  %v1412_v51 = vpack.c.bf16 %v1042_v55, %v1026_v10  ;;  %v1477_v6 = vld [vmem:[#allocation5 + $0x128] sm:$0xff]  ;;  %v1478_v28 = vld [vmem:[#allocation5 + $0x120] sm:$0xff]  ;;  %v1479_v55 = vld [vmem:[#allocation5 + $0x130] sm:$0xff] }
 0x57e   :  { %1393 = vmatprep.subr.bf16.mxu0 %v1392_v11  ;;  %v1053_v20 = vsel %vm182_vm6, %v1044_v14, %v1046_v43  ;;  %v1480_v10 = vld [vmem:[#allocation5 + $0x138] sm:$0xff] }
 0x57f   :  { %1395 = vmatpush1.bf16.msra.mxu0 %v1394_v62  ;;  %1413 = vmatprep.subr.bf16.mxu1 %v1412_v51  ;;  %v1055_v56 = vmul.f32 %v1465_v61, %v1053_v20  ;;  %v958_v11 = vld [vmem:[#allocation7 + $0x18] sm:$0xff] }
 0x580   :  { %v1048_v44 = vpop.permute.xlu0 %1047  ;;  %1415 = vmatpush1.bf16.msra.mxu1 %v1414_v22 }
 0x581   :  { %v1050_v9 = vpop.permute.xlu1 %1049  ;;  %v1052_v24 = vsel %vm182_vm6, %v1046_v43, %v1048_v44 }
 0x582   :  { %v1051_v45 = vsel %vm182_vm6, %v1048_v44, %v1050_v9  ;;  %v1054_v52 = vsel %vm182_vm6, %v1050_v9, %v1044_v14  ;;  %v1056_v30 = vmul.f32 %v1467_v60, %v1052_v24 }
 0x583   :  { %v1057_v35 = vmul.f32 %v1469_v31, %v1051_v45  ;;  %v1058_v21 = vmul.f32 %v1470_v3, %v1054_v52 }
 0x584   :  { %v1060_v17 = vpop.permute.xlu0 %1059 }
 0x585   :  { %v1062_v15 = vpop.permute.xlu1 %1061 }
 0x586   :  { %v1069_v18 = vsel %vm203_vm5, %v1060_v17, %v1062_v15 }
 0x587   :  { %v1071_v63 = vmul.f32 %v1466_v58, %v1069_v18 }
 0x588   :  { %v1064_v57 = vpop.permute.xlu0 %1063 }
 0x589   :  { %v1068_v41 = vsel %vm203_vm5, %v1062_v15, %v1064_v57  ;;  %v1066_v5 = vpop.permute.xlu1 %1065  ;;  %v1398_v32 = vpack.c.bf16 %v1071_v63, %v1055_v56 }
 0x58a   :  { %v1072_v36 = vmul.f32 %v1468_v40, %v1068_v41  ;;  %v1067_v50 = vsel %vm203_vm5, %v1064_v57, %v1066_v5  ;;  %v1070_v23 = vsel %vm203_vm5, %v1066_v5, %v1060_v17 }
 0x58b   :  { %v1073_v25 = vmul.f32 %v1471_v38, %v1067_v50  ;;  %v1074_v1 = vmul.f32 %v1472_v26, %v1070_v23 }
 0x58c   :  { %v1076_v46 = vpop.permute.xlu0 %1075  ;;  %v1396_v29 = vpack.c.bf16 %v1072_v36, %v1056_v30 }
 0x58d   :  { %v1418_v0 = vpack.c.bf16 %v1073_v25, %v1057_v35  ;;  %v1078_v34 = vpop.permute.xlu1 %1077  ;;  %v1416_v27 = vpack.c.bf16 %v1074_v1, %v1058_v21 }
 0x58e   :  { %v1085_v37 = vsel %vm224_vm7, %v1076_v46, %v1078_v34  ;;  %1397 = vmatprep.subr.bf16.mxu0 %v1396_v29 }
 0x58f   :  { %1399 = vmatpush1.bf16.msra.mxu0 %v1398_v32  ;;  %1417 = vmatprep.subr.bf16.mxu1 %v1416_v27  ;;  %v1087_v48 = vmul.f32 %v1473_v39, %v1085_v37 }
 0x590   :  { %v1080_v33 = vpop.permute.xlu0 %1079  ;;  %1419 = vmatpush1.bf16.msra.mxu1 %v1418_v0 }
 0x591   :  { %v1084_v53 = vsel %vm224_vm7, %v1078_v34, %v1080_v33  ;;  %v1082_v4 = vpop.permute.xlu1 %1081  ;;  %v1402_v16 = vpack.c.bf16 %v1478_v28, %v1087_v48 }
 0x592   :  { %v1088_v2 = vmul.f32 %v1474_v7, %v1084_v53  ;;  %v1083_v12 = vsel %vm224_vm7, %v1080_v33, %v1082_v4  ;;  %v1086_v13 = vsel %vm224_vm7, %v1082_v4, %v1076_v46 }
 0x593   :  { %v1089_v49 = vmul.f32 %v1475_v47, %v1083_v12  ;;  %v1090_v59 = vmul.f32 %v1476_v42, %v1086_v13 }
 0x594   :  { %v1400_v19 = vpack.c.bf16 %v1477_v6, %v1088_v2 }
 0x595   :  { %v1422_v54 = vpack.c.bf16 %v1479_v55, %v1089_v49  ;;  %v1420_v14 = vpack.c.bf16 %v1480_v10, %v1090_v59 }
 0x596   :  { %1401 = vmatprep.subr.bf16.mxu0 %v1400_v19 }
 0x597   :  { %1403 = vmatpush1.bf16.msra.mxu0 %v1402_v16  ;;  %1421 = vmatprep.subr.bf16.mxu1 %v1420_v14 }
 0x598   :  { %1423 = vmatpush1.bf16.msra.mxu1 %v1422_v54 }
 0x59a   :  { %1262 = vmatmul.mubr.msk.f32.vlgmr.msra.gmra.mrb[6].mxu0 %vm241_vm8, %v958_v11 }
 0x59b   :  { %1263 = vmatmul.mubr.msk.f32.vlgmr.msra.gmra.mrb[6].mxu1 %vm241_vm8, %v958_v11 }
 0x66d   :  { %v1160_v8 = vpop.f32.mrb[6].mxu0 }
 0x66e   :  { %1236 = vst [vmem:[#allocation8] sm:$0xff] %v1160_v8  ;;  %v1162_v62 = vpop.f32.mrb[7].mxu0  ;;  %v1231_v22 = vpop.f32.mrb[6].mxu1 }
 0x66f   :  { %1237 = vst [vmem:[#allocation8 + $0x8] sm:$0xff] %v1162_v62  ;;  %1238 = vst [vmem:[#allocation8 + $0x10] sm:$0xff] %v1231_v22  ;;  %v1233_v43 = vpop.f32.mrb[7].mxu1 }
 0x670   :  { %1239 = vst [vmem:[#allocation8 + $0x18] sm:$0xff] %v1233_v43 }
 0x671   :  { %1558 = shalt.err (!%p1555_p0)
}
 0x672   :  { %s1559_s8 = scalar_lea.hbm %s2449_s3, 512 }
 0x673   :  { %p1560_p1 = scmp.ne.s32.totalorder %s2449_s3, %s1559_s8  ;;  %p1563_p2 = scmp.lt.u32.totalorder %s1559_s8, %s2449_s3 }
 0x675   :  { %p1565_p3 = pnand %p1563_p2, %p1560_p1 }
 0x677   :  { %1568 = shalt.err (!%p1565_p3)
}
 0x678   :  { %1249 = dma.vmem_to_hbm [thread:$0]  %s1247_s4, 512, %s2449_s3, [#allocation4]  }
 0x679   :  { %1573 = dma.done.wait [#allocation4], 512  }
 0x67a   :  { %1574 = vsyncadd [#allocation4], 4294966784 }
 0x67b   :  { %1253 = vsyncpa [#allocation3], 1 }
 0x67c   :  { %1254 = vsyncpa [#allocation6], 1 }
 0x67d   :  { %1255 = vsyncpa [#allocation4], 1 }

</bundles_post_ra>
